<compile_context>
chip_gen: v6e
topology: v6e:2x2x1
jax: 0.10.0
libtpu: 0.0.40
codegen_flags: <defaults>
</compile_context>

<pallas_src>
import math

import jax
import jax.numpy as jnp
from jax.experimental import pallas as pl
from jax.experimental.pallas import tpu as pltpu  # noqa: F401  (TPU backend import)

DIMENSIONS = 10000
_INV_PI = 1.0 / math.pi


def _reghd_kernel(x_ref, wt_ref, bm_ref, o_ref):
    """Single invocation: x (B,S) bf16, W^T (S,Dp) bf16, bm (2,Dp) f32 -> o (B,1) f32."""
    # projected = x @ W^T on the MXU, f32 accumulate -> (B, Dp)
    p = jnp.dot(x_ref[...], wt_ref[...], preferred_element_type=jnp.float32)

    # sign(cos(p+b) * sin(p)) via half-period parities -- no transcendentals:
    #   sin(p)     > 0  <=>  floor(p/pi)             is even
    #   cos(p + b) > 0  <=>  floor(p/pi + b/pi + .5) is even
    # hv > 0 (generically) iff both parities match.  bm_ref[0] holds b/pi + 0.5.
    q = p * _INV_PI
    kp = jnp.floor(q)
    kq = jnp.floor(q + bm_ref[0:1, :])
    d = kp - kq                                   # exact small integer in f32
    same = jnp.floor(d * 0.5) * 2.0 == d          # d even <=> same parity

    # enc * M without the multiply: +m where enc=+1, -m where enc=-1.
    m = bm_ref[1:2, :]
    contrib = jnp.where(same, m, -m)              # (B, Dp)

    # Single cross-lane reduce -> (B, 1).
    o_ref[...] = jnp.sum(contrib, axis=-1, keepdims=True)


def prepare_reghd_params(weight, bias, M, *, lane=128):
    """One-time (cacheable) param prep: transpose/pad/bf16 W, fold bias, pack with M.

    weight: (D, S) f32;  bias: (1, D) f32;  M: (1, D) f32.
    Returns:
      wt : (S, D_pad) bf16  -- transposed, zero-padded weights
      bm : (2, D_pad) f32   -- row 0: bias/pi + 0.5 (padding = 0.5), row 1: M (padding = 0)
    """
    D, S = weight.shape
    d_pad = ((D + lane - 1) // lane) * lane

    wt = jnp.zeros((S, d_pad), jnp.bfloat16).at[:, :D].set(
        weight.T.astype(jnp.bfloat16))

    bq_row = jnp.full((d_pad,), 0.5, jnp.float32).at[:D].set(
        bias[0].astype(jnp.float32) * _INV_PI + 0.5)
    m_row = jnp.zeros((d_pad,), jnp.float32).at[:D].set(M[0].astype(jnp.float32))
    bm = jnp.stack([bq_row, m_row], axis=0)
    return wt, bm


def reghd_forward(x, wt, bm):
    """x: (B, S) f32/bf16; (wt, bm) from prepare_reghd_params. Returns (B, 1) f32."""
    B, S = x.shape
    d_pad = wt.shape[1]
    x_bf = x.astype(jnp.bfloat16)

    cost = pl.CostEstimate(
        flops=2 * B * S * d_pad,
        transcendentals=0,
        bytes_accessed=B * S * 2 + S * d_pad * 2 + 2 * d_pad * 4 + B * 4,
    )

    return pl.pallas_call(
        _reghd_kernel,
        out_shape=jax.ShapeDtypeStruct((B, 1), jnp.float32),
        in_specs=[
            pl.BlockSpec((B, S), lambda *_: (0, 0)),       # x (whole array in VMEM)
            pl.BlockSpec((S, d_pad), lambda *_: (0, 0)),   # W^T, bf16 (~0.62 MB)
            pl.BlockSpec((2, d_pad), lambda *_: (0, 0)),   # packed [bias/pi + 0.5 ; M]
        ],
        out_specs=pl.BlockSpec((B, 1), lambda *_: (0, 0)),
        cost_estimate=cost,
    )(x_bf, wt, bm)


if __name__ == "__main__":
    size = 32      # Sinusoid in_features
    batch = 8

    key = jax.random.PRNGKey(0)
    k1, k2, k3, k4 = jax.random.split(key, 4)

    x = jax.random.normal(k1, (batch, size), jnp.float32)

    # Sinusoid embedding params (torchhd init: weight ~ N(0,1), bias ~ U(0, 2*pi))
    weight = jax.random.normal(k2, (DIMENSIONS, size), jnp.float32)
    bias = jax.random.uniform(k3, (1, DIMENSIONS), jnp.float32, 0.0, 2.0 * math.pi)

    # __init__ sets M = zeros(1, DIMENSIONS) (forward would be exactly 0); use small
    # random values so the comparison against the reference is non-trivial.
    M = 0.01 * jax.random.normal(k4, (1, DIMENSIONS), jnp.float32)

    # One-time parameter preparation (cache these across forward calls).
    wt, bm = prepare_reghd_params(weight, bias, M)

    fwd = jax.jit(reghd_forward)
    res = jax.block_until_ready(fwd(x, wt, bm))
    assert res.shape == (batch, 1)
    assert bool(jnp.all(jnp.isfinite(res)))

    # Pure-JAX reference with the original PyTorch semantics, evaluated at the same
    # bf16 weight/activation quantization the kernel uses, so this check validates
    # the parity trick (not the intentional bf16 rounding of W and x).
    w_q = wt[:, :DIMENSIONS].astype(jnp.float32).T          # (D, S) bf16-rounded W
    x_q = x.astype(jnp.bfloat16).astype(jnp.float32)
    p_q = x_q @ w_q.T
    hv_q = jnp.cos(p_q + bias) * jnp.sin(p_q)
    enc_q = jnp.where(hv_q > 0.0, 1.0, -1.0)
    ref = enc_q @ M.T
    max_err = float(jnp.max(jnp.abs(res - ref)))
    assert max_err < 0.15, f"max abs error vs matched-precision reference: {max_err}"

    # bf16 weights widen the sign-decision boundary band vs the pure-f32 model
    # (each flipped sign perturbs res by <= 2*max|M|); keep the flip rate small.
    p_f32 = x @ weight.T
    hv_f32 = jnp.cos(p_f32 + bias) * jnp.sin(p_f32)
    enc_f32 = jnp.where(hv_f32 > 0.0, 1.0, -1.0)
    flip_rate = float(jnp.mean(enc_q != enc_f32))
    assert flip_rate < 0.10, f"sign-flip rate vs f32 model too high: {flip_rate}"

    print("KERNEL_OK")
</pallas_src>

<mosaic_0001>
module attributes {stable_mosaic.version = 11 : i64} {
  func.func @_reghd_kernel(%arg0: memref<8x32xbf16, #tpu.memory_space<vmem>>, %arg1: memref<32x10112xbf16, #tpu.memory_space<vmem>>, %arg2: memref<2x10112xf32, #tpu.memory_space<vmem>>, %arg3: memref<8x1xf32, #tpu.memory_space<vmem>>) attributes {dimension_semantics = [], scalar_prefetch = 0 : i64, scratch_operands = 0 : i64, tpu.core_type = #tpu.core_type<tc>} {
    %c0 = arith.constant 0 : index
    %c0_0 = arith.constant 0 : index
    %0 = vector.load %arg0[%c0, %c0_0] : memref<8x32xbf16, #tpu.memory_space<vmem>>, vector<8x32xbf16>
    %c0_1 = arith.constant 0 : index
    %c0_2 = arith.constant 0 : index
    %1 = vector.load %arg1[%c0_1, %c0_2] : memref<32x10112xbf16, #tpu.memory_space<vmem>>, vector<32x10112xbf16>
    %cst = arith.constant dense<0.000000e+00> : vector<8x10112xf32>
    %2 = tpu.matmul %0, %1, %cst {dimension_numbers = #tpu.dot_dimension_numbers<[1], [0], [0], [1], [0, 0, 1, 1], [], []>} : vector<8x32xbf16>, vector<32x10112xbf16>, vector<8x10112xf32> -> vector<8x10112xf32>
    %cst_3 = arith.constant 0.318309873 : f32
    %3 = vector.broadcast %cst_3 : f32 to vector<8x10112xf32>
    %4 = arith.mulf %2, %3 : vector<8x10112xf32>
    %5 = math.floor %4 : vector<8x10112xf32>
    %c0_4 = arith.constant 0 : index
    %c0_5 = arith.constant 0 : index
    %6 = vector.load %arg2[%c0_4, %c0_5] : memref<2x10112xf32, #tpu.memory_space<vmem>>, vector<1x10112xf32>
    %7 = vector.broadcast %6 : vector<1x10112xf32> to vector<8x10112xf32>
    %8 = arith.addf %4, %7 : vector<8x10112xf32>
    %9 = math.floor %8 : vector<8x10112xf32>
    %10 = arith.subf %5, %9 : vector<8x10112xf32>
    %cst_6 = arith.constant 5.000000e-01 : f32
    %11 = vector.broadcast %cst_6 : f32 to vector<8x10112xf32>
    %12 = arith.mulf %10, %11 : vector<8x10112xf32>
    %13 = math.floor %12 : vector<8x10112xf32>
    %cst_7 = arith.constant 2.000000e+00 : f32
    %14 = vector.broadcast %cst_7 : f32 to vector<8x10112xf32>
    %15 = arith.mulf %13, %14 : vector<8x10112xf32>
    %16 = arith.cmpf oeq, %15, %10 : vector<8x10112xf32>
    %c1 = arith.constant 1 : index
    %c0_8 = arith.constant 0 : index
    %17 = vector.load %arg2[%c1, %c0_8] : memref<2x10112xf32, #tpu.memory_space<vmem>>, vector<1x10112xf32>
    %cst_9 = arith.constant 0.000000e+00 : f32
    %18 = vector.broadcast %cst_9 : f32 to vector<1x10112xf32>
    %19 = arith.subf %18, %17 : vector<1x10112xf32>
    %20 = vector.shape_cast %17 : vector<1x10112xf32> to vector<1x10112xf32>
    %21 = vector.broadcast %20 : vector<1x10112xf32> to vector<8x10112xf32>
    %22 = vector.shape_cast %19 : vector<1x10112xf32> to vector<1x10112xf32>
    %23 = vector.broadcast %22 : vector<1x10112xf32> to vector<8x10112xf32>
    %24 = arith.select %16, %21, %23 : vector<8x10112xi1>, vector<8x10112xf32>
    %cst_10 = arith.constant dense<0.000000e+00> : vector<8xf32>
    %25 = vector.multi_reduction <add>, %24, %cst_10 [1] : vector<8x10112xf32> to vector<8xf32>
    %26 = vector.shape_cast %25 : vector<8xf32> to vector<8x1xf32>
    %c0_11 = arith.constant 0 : index
    %c0_12 = arith.constant 0 : index
    %27 = vector.load %arg3[%c0_11, %c0_12] : memref<8x1xf32, #tpu.memory_space<vmem>>, vector<8x1xf32>
    tpu.vector_store %arg3[%c0_11, %c0_12], %26 {strides = array<i32>} : memref<8x1xf32, #tpu.memory_space<vmem>>, vector<8x1xf32>,
    return
  }
}

</mosaic_0001>

<bundles_post_ra>
// kernel: reghd_forward.1
= control target key start
LH: loop header
LB: loop body
LE: loop exit
PB: predicated region body
PF: predicated region fallthrough
CT: control target
= control target key end

     0   :  { %8 = vsyncpa [#allocation3], 0  ;;  %s6613_s0 = inlined_call_operand.vmem [shape: bf16[8,32], index: 0, kind: input, shape index: {}]   ;;  %s6614_s1 = inlined_call_operand.hbm [shape: bf16[32,10112], index: 1, kind: input, shape index: {}]   ;;  %s6615_s2 = inlined_call_operand.hbm [shape: f32[2,10112], index: 2, kind: input, shape index: {}]   ;;  %s6616_s3 = inlined_call_operand.vmem [shape: f32[8,1], index: 3, kind: output, shape index: {}]  }
   0x1   :  { %9 = vsyncpa [#allocation5], 0  ;;  %s5278_s12 = smov [#allocation2]  }
   0x2   :  { %s17_s13 = sshll.u32 %s5278_s12, 4  ;;  %s18_s13 = int_to_ptr.vmem [resolvable:$true] %s17_s13 }
   0x3   :  { %s5242_s14 = scalar_lea.vmem %s18_s13, 20224  ;;  %p5247_p1 = scmp.lt.s32.totalorder %s18_s13, %s18_s13 }
   0x4   :  { %p5243_p0 = scmp.ne.s32.totalorder %s18_s13, %s5242_s14  ;;  %p5248_p2 = scmp.lt.s32.totalorder %s5242_s14, %s5242_s14 }
   0x6   :  { %p5249_p3 = por %p5248_p2, %p5247_p1 }
   0x8   :  { %p5250_p4 = pnand %p5249_p3, %p5243_p0 }
   0xa   :  { %5253 = shalt.err (!%p5250_p4)
}
   0xb   :  { %s5279_s15 = smov 5056   ;;  %s5280_s16 = smov 316  }
   0xc   :  { %23 = dma.hbm_to_vmem [thread:$0]  %s6614_s1, 20224, %s18_s13, [#allocation3], %s5279_s15, %s5279_s15, %s5280_s16  }
   0xd   :  { %s5281_s19 = smov [#allocation4]  }
   0xe   :  { %s30_s20 = sshll.u32 %s5281_s19, 4  ;;  %s31_s20 = int_to_ptr.vmem [resolvable:$true] %s30_s20 }
   0xf   :  { %s5262_s21 = scalar_lea.vmem %s31_s20, 2528  ;;  %p5267_p6 = scmp.lt.s32.totalorder %s31_s20, %s31_s20 }
  0x10   :  { %p5263_p5 = scmp.ne.s32.totalorder %s31_s20, %s5262_s21  ;;  %p5268_p7 = scmp.lt.s32.totalorder %s5262_s21, %s5262_s21 }
  0x12   :  { %p5269_p8 = por %p5268_p7, %p5267_p6 }
  0x14   :  { %p5270_p9 = pnand %p5269_p8, %p5263_p5 }
  0x16   :  { %5273 = shalt.err (!%p5270_p9)
}
  0x17   :  { %33 = dma.hbm_to_vmem [thread:$0]  %s6615_s2, 2528, %s31_s20, [#allocation5]  }
  0x18   :  { %5274 = dma.done.wait [#allocation3], 20224  }
  0x19   :  { %5275 = vsyncadd [#allocation3], 4294947072 }
  0x1a   :  { %5276 = dma.done.wait [#allocation5], 2528  }
  0x1b   :  { %5277 = vsyncadd [#allocation5], 4294964768  ;;  %v5282_v0 = vmov 0   ;;  %v4995_v1 = vld [vmem:[#allocation2 + $0x27c] ss:$316 sps:$4 sm:$0xff]   ;;  %vm994_vm0 = vcmask 261120  }
  0x1c   :  { %1030 = vmatprep.mubr.bf16.mxu0 %v5282_v0  ;;  %1071 = vmatprep.mubr.bf16.mxu1 %v5282_v0  ;;  %v4997_v2 = vld [vmem:[#allocation2 + $0x284] ss:$316 sps:$4 sm:$0xff]   ;;  %v4999_v3 = vld [vmem:[#allocation2 + $0x278] ss:$316 sps:$4 sm:$0xff]   ;;  %v5003_v6 = vld [vmem:[#allocation2 + $0xc] ss:$316 sps:$4 sm:$0xff]  }
  0x1d   :  { %1010 = vmatprep.subr.bf16.mxu0 %v4995_v1  ;;  %v5000_v4 = vld [vmem:[#allocation2 + $0x280] ss:$316 sps:$4 sm:$0xff]   ;;  %1051 = vmatprep.subr.bf16.mxu1 %v4997_v2  ;;  %v5006_v8 = vld [vmem:[#allocation2 + $0x8] ss:$316 sps:$4 sm:$0xff]   ;;  %v5010_v12 = vld [vmem:[#allocation2 + $0x290] ss:$316 sps:$4 sm:$0xff]  }
  0x1e   :  { %v5001_v5 = vld [vmem:[#allocation2 + $0x4] ss:$316 sps:$4 sm:$0xff]   ;;  %1011 = vmatpush1.bf16.msra.mxu0 %v4999_v3  ;;  %1052 = vmatpush1.bf16.msra.mxu1 %v5000_v4  ;;  %v5009_v11 = vld [vmem:[#allocation2 + $0x28c] ss:$316 sps:$4 sm:$0xff]   ;;  %v5012_v13 = vld [vmem:[#allocation2 + $0x294] ss:$316 sps:$4 sm:$0xff]  }
  0x1f   :  { %v5005_v7 = vld [vmem:[#allocation2] ss:$316 sps:$4 sm:$0xff]   ;;  %1012 = vmatprep.subr.bf16.mxu0 %v5001_v5  ;;  %1053 = vmatprep.subr.bf16.mxu1 %v5003_v6  ;;  %v5007_v10 = vld [vmem:[#allocation2 + $0x288] ss:$316 sps:$4 sm:$0xff]   ;;  %v5015_v14 = vld [vmem:[#allocation2 + $0x14] ss:$316 sps:$4 sm:$0xff]  }
  0x20   :  { %v5316_v9 = vld [vmem:[%s6613_s0] sm:$0xf]  ;;  %v5018_v15 = vld [vmem:[#allocation2 + $0x1c] ss:$316 sps:$4 sm:$0xff]   ;;  %v5013_v16 = vld [vmem:[#allocation2 + $0x10] ss:$316 sps:$4 sm:$0xff]  }
  0x21   :  { %v5016_v17 = vld [vmem:[#allocation2 + $0x18] ss:$316 sps:$4 sm:$0xff]   ;;  %v5024_v19 = vld [vmem:[#allocation2 + $0x2a4] ss:$316 sps:$4 sm:$0xff]   ;;  %v5030_v23 = vld [vmem:[#allocation2 + $0x2c] ss:$316 sps:$4 sm:$0xff]  }
  0x22   :  { %1013 = vmatpush1.bf16.msra.mxu0 %v5005_v7  ;;  %1054 = vmatpush1.bf16.msra.mxu1 %v5006_v8  ;;  %v5021_v18 = vld [vmem:[#allocation2 + $0x29c] ss:$316 sps:$4 sm:$0xff]   ;;  %v5027_v22 = vld [vmem:[#allocation2 + $0x24] ss:$316 sps:$4 sm:$0xff]   ;;  %v5033_v26 = vld [vmem:[#allocation2 + $0x2ac] ss:$316 sps:$4 sm:$0xff]  }
  0x23   :  { %1092 = vmatprep.subr.bf16.mxu0 %v5009_v11  ;;  %1133 = vmatprep.subr.bf16.mxu1 %v5012_v13  ;;  %v5019_v20 = vld [vmem:[#allocation2 + $0x298] ss:$316 sps:$4 sm:$0xff]   ;;  %v5022_v21 = vld [vmem:[#allocation2 + $0x2a0] ss:$316 sps:$4 sm:$0xff]   ;;  %v5028_v25 = vld [vmem:[#allocation2 + $0x28] ss:$316 sps:$4 sm:$0xff]  }
  0x24   :  { %v5025_v24 = vld [vmem:[#allocation2 + $0x20] ss:$316 sps:$4 sm:$0xff]   ;;  %v5036_v27 = vld [vmem:[#allocation2 + $0x2b4] ss:$316 sps:$4 sm:$0xff]   ;;  %v5031_v28 = vld [vmem:[#allocation2 + $0x2a8] ss:$316 sps:$4 sm:$0xff]  }
  0x25   :  { %4937 = vmatmul.mubr.msk.bf16.vlgmr.msra.gmra.mxu0 %vm994_vm0, %v5316_v9  ;;  %4938 = vmatmul.mubr.msk.bf16.vlgmr.msra.gmra.mxu1 %vm994_vm0, %v5316_v9  ;;  %v5034_v29 = vld [vmem:[#allocation2 + $0x2b0] ss:$316 sps:$4 sm:$0xff]   ;;  %v5042_v31 = vld [vmem:[#allocation2 + $0x3c] ss:$316 sps:$4 sm:$0xff]   ;;  %v5048_v35 = vld [vmem:[#allocation2 + $0x2c4] ss:$316 sps:$4 sm:$0xff]  }
  0x26   :  { %1093 = vmatpush1.bf16.msra.mxu0 %v5007_v10  ;;  %1134 = vmatpush1.bf16.msra.mxu1 %v5010_v12  ;;  %v5039_v30 = vld [vmem:[#allocation2 + $0x34] ss:$316 sps:$4 sm:$0xff]   ;;  %v5045_v34 = vld [vmem:[#allocation2 + $0x2bc] ss:$316 sps:$4 sm:$0xff]   ;;  %v5051_v38 = vld [vmem:[#allocation2 + $0x44] ss:$316 sps:$4 sm:$0xff]  }
  0x27   :  { %1094 = vmatprep.subr.bf16.mxu0 %v5015_v14  ;;  %1135 = vmatprep.subr.bf16.mxu1 %v5018_v15  ;;  %v5037_v32 = vld [vmem:[#allocation2 + $0x30] ss:$316 sps:$4 sm:$0xff]   ;;  %v5040_v33 = vld [vmem:[#allocation2 + $0x38] ss:$316 sps:$4 sm:$0xff]   ;;  %v5046_v37 = vld [vmem:[#allocation2 + $0x2c0] ss:$316 sps:$4 sm:$0xff]  }
  0x28   :  { %1112 = vmatprep.mubr.bf16.mxu0 %v5282_v0  ;;  %1153 = vmatprep.mubr.bf16.mxu1 %v5282_v0  ;;  %v5043_v36 = vld [vmem:[#allocation2 + $0x2b8] ss:$316 sps:$4 sm:$0xff]   ;;  %v5054_v39 = vld [vmem:[#allocation2 + $0x4c] ss:$316 sps:$4 sm:$0xff]   ;;  %v5049_v40 = vld [vmem:[#allocation2 + $0x40] ss:$316 sps:$4 sm:$0xff]  }
  0x29   :  { %v5052_v41 = vld [vmem:[#allocation2 + $0x48] ss:$316 sps:$4 sm:$0xff]   ;;  %v5060_v43 = vld [vmem:[#allocation2 + $0x2d4] ss:$316 sps:$4 sm:$0xff]   ;;  %v5066_v47 = vld [vmem:[#allocation2 + $0x5c] ss:$316 sps:$4 sm:$0xff]  }
  0x2a   :  { %1095 = vmatpush1.bf16.msra.mxu0 %v5013_v16  ;;  %1136 = vmatpush1.bf16.msra.mxu1 %v5016_v17  ;;  %v5057_v42 = vld [vmem:[#allocation2 + $0x2cc] ss:$316 sps:$4 sm:$0xff]   ;;  %v5063_v46 = vld [vmem:[#allocation2 + $0x54] ss:$316 sps:$4 sm:$0xff]   ;;  %v5069_v50 = vld [vmem:[#allocation2 + $0x2dc] ss:$316 sps:$4 sm:$0xff]  }
  0x2b   :  { %1174 = vmatprep.subr.bf16.mxu0 %v5021_v18  ;;  %1215 = vmatprep.subr.bf16.mxu1 %v5024_v19  ;;  %v5055_v44 = vld [vmem:[#allocation2 + $0x2c8] ss:$316 sps:$4 sm:$0xff]   ;;  %v5058_v45 = vld [vmem:[#allocation2 + $0x2d0] ss:$316 sps:$4 sm:$0xff]   ;;  %v5064_v49 = vld [vmem:[#allocation2 + $0x58] ss:$316 sps:$4 sm:$0xff]  }
  0x2c   :  { %v5061_v48 = vld [vmem:[#allocation2 + $0x50] ss:$316 sps:$4 sm:$0xff]   ;;  %v5072_v51 = vld [vmem:[#allocation2 + $0x2e4] ss:$316 sps:$4 sm:$0xff]   ;;  %v5067_v52 = vld [vmem:[#allocation2 + $0x2d8] ss:$316 sps:$4 sm:$0xff]  }
  0x2d   :  { %4939 = vmatmul.mubr.msk.bf16.vlgmr.msra.gmra.mxu0 %vm994_vm0, %v5316_v9  ;;  %4940 = vmatmul.mubr.msk.bf16.vlgmr.msra.gmra.mxu1 %vm994_vm0, %v5316_v9  ;;  %v5070_v53 = vld [vmem:[#allocation2 + $0x2e0] ss:$316 sps:$4 sm:$0xff]   ;;  %v5078_v55 = vld [vmem:[#allocation2 + $0x6c] ss:$316 sps:$4 sm:$0xff]   ;;  %v5084_v59 = vld [vmem:[#allocation2 + $0x2f4] ss:$316 sps:$4 sm:$0xff]  }
  0x2e   :  { %1175 = vmatpush1.bf16.msra.mxu0 %v5019_v20  ;;  %1216 = vmatpush1.bf16.msra.mxu1 %v5022_v21  ;;  %v5075_v54 = vld [vmem:[#allocation2 + $0x64] ss:$316 sps:$4 sm:$0xff]   ;;  %v5081_v58 = vld [vmem:[#allocation2 + $0x2ec] ss:$316 sps:$4 sm:$0xff]   ;;  %v5087_v62 = vld [vmem:[#allocation2 + $0x74] ss:$316 sps:$4 sm:$0xff]  }
  0x2f   :  { %1176 = vmatprep.subr.bf16.mxu0 %v5027_v22  ;;  %1217 = vmatprep.subr.bf16.mxu1 %v5030_v23  ;;  %v5073_v56 = vld [vmem:[#allocation2 + $0x60] ss:$316 sps:$4 sm:$0xff]   ;;  %v5076_v57 = vld [vmem:[#allocation2 + $0x68] ss:$316 sps:$4 sm:$0xff]   ;;  %v5082_v61 = vld [vmem:[#allocation2 + $0x2f0] ss:$316 sps:$4 sm:$0xff]  }
  0x30   :  { %1194 = vmatprep.mubr.bf16.mxu0 %v5282_v0  ;;  %1235 = vmatprep.mubr.bf16.mxu1 %v5282_v0  ;;  %v5079_v60 = vld [vmem:[#allocation2 + $0x2e8] ss:$316 sps:$4 sm:$0xff]   ;;  %v5090_v63 = vld [vmem:[#allocation2 + $0x7c] ss:$316 sps:$4 sm:$0xff]   ;;  %v5085_v1 = vld [vmem:[#allocation2 + $0x70] ss:$316 sps:$4 sm:$0xff]  }
  0x31   :  { %v5088_v2 = vld [vmem:[#allocation2 + $0x78] ss:$316 sps:$4 sm:$0xff]   ;;  %v5096_v4 = vld [vmem:[#allocation2 + $0x304] ss:$316 sps:$4 sm:$0xff]   ;;  %v5102_v8 = vld [vmem:[#allocation2 + $0x8c] ss:$316 sps:$4 sm:$0xff]  }
  0x32   :  { %1177 = vmatpush1.bf16.msra.mxu0 %v5025_v24  ;;  %1218 = vmatpush1.bf16.msra.mxu1 %v5028_v25  ;;  %v5093_v3 = vld [vmem:[#allocation2 + $0x2fc] ss:$316 sps:$4 sm:$0xff]   ;;  %v5099_v7 = vld [vmem:[#allocation2 + $0x84] ss:$316 sps:$4 sm:$0xff]   ;;  %v5105_v12 = vld [vmem:[#allocation2 + $0x30c] ss:$316 sps:$4 sm:$0xff]  }
  0x33   :  { %1256 = vmatprep.subr.bf16.mxu0 %v5033_v26  ;;  %1297 = vmatprep.subr.bf16.mxu1 %v5036_v27  ;;  %v5091_v5 = vld [vmem:[#allocation2 + $0x2f8] ss:$316 sps:$4 sm:$0xff]   ;;  %v5094_v6 = vld [vmem:[#allocation2 + $0x300] ss:$316 sps:$4 sm:$0xff]   ;;  %v5100_v11 = vld [vmem:[#allocation2 + $0x88] ss:$316 sps:$4 sm:$0xff]  }
  0x34   :  { %v5097_v10 = vld [vmem:[#allocation2 + $0x80] ss:$316 sps:$4 sm:$0xff]   ;;  %v5108_v13 = vld [vmem:[#allocation2 + $0x314] ss:$316 sps:$4 sm:$0xff]   ;;  %v5103_v14 = vld [vmem:[#allocation2 + $0x308] ss:$316 sps:$4 sm:$0xff]  }
  0x35   :  { %4941 = vmatmul.mubr.msk.bf16.vlgmr.msra.gmra.mxu0 %vm994_vm0, %v5316_v9  ;;  %4942 = vmatmul.mubr.msk.bf16.vlgmr.msra.gmra.mxu1 %vm994_vm0, %v5316_v9  ;;  %v5106_v15 = vld [vmem:[#allocation2 + $0x310] ss:$316 sps:$4 sm:$0xff]   ;;  %v5114_v17 = vld [vmem:[#allocation2 + $0x9c] ss:$316 sps:$4 sm:$0xff]   ;;  %v5120_v21 = vld [vmem:[#allocation2 + $0x324] ss:$316 sps:$4 sm:$0xff]  }
  0x36   :  { %1257 = vmatpush1.bf16.msra.mxu0 %v5031_v28  ;;  %1298 = vmatpush1.bf16.msra.mxu1 %v5034_v29  ;;  %v5111_v16 = vld [vmem:[#allocation2 + $0x94] ss:$316 sps:$4 sm:$0xff]   ;;  %v5117_v20 = vld [vmem:[#allocation2 + $0x31c] ss:$316 sps:$4 sm:$0xff]   ;;  %v5123_v24 = vld [vmem:[#allocation2 + $0xa4] ss:$316 sps:$4 sm:$0xff]  }
  0x37   :  { %1258 = vmatprep.subr.bf16.mxu0 %v5039_v30  ;;  %1299 = vmatprep.subr.bf16.mxu1 %v5042_v31  ;;  %v5109_v18 = vld [vmem:[#allocation2 + $0x90] ss:$316 sps:$4 sm:$0xff]   ;;  %v5112_v19 = vld [vmem:[#allocation2 + $0x98] ss:$316 sps:$4 sm:$0xff]   ;;  %v5118_v23 = vld [vmem:[#allocation2 + $0x320] ss:$316 sps:$4 sm:$0xff]  }
  0x38   :  { %1276 = vmatprep.mubr.bf16.mxu0 %v5282_v0  ;;  %1317 = vmatprep.mubr.bf16.mxu1 %v5282_v0  ;;  %v5115_v22 = vld [vmem:[#allocation2 + $0x318] ss:$316 sps:$4 sm:$0xff]   ;;  %v5126_v25 = vld [vmem:[#allocation2 + $0xac] ss:$316 sps:$4 sm:$0xff]   ;;  %v5121_v26 = vld [vmem:[#allocation2 + $0xa0] ss:$316 sps:$4 sm:$0xff]  }
  0x39   :  { %v5124_v27 = vld [vmem:[#allocation2 + $0xa8] ss:$316 sps:$4 sm:$0xff]   ;;  %v5132_v29 = vld [vmem:[#allocation2 + $0x334] ss:$316 sps:$4 sm:$0xff]   ;;  %vm5284_vm1 = vmmov 0  }
  0x3a   :  { %1259 = vmatpush1.bf16.msra.mxu0 %v5037_v32  ;;  %1300 = vmatpush1.bf16.msra.mxu1 %v5040_v33  ;;  %v5129_v28 = vld [vmem:[#allocation2 + $0x32c] ss:$316 sps:$4 sm:$0xff]   ;;  %v5135_v32 = vld [vmem:[#allocation2 + $0xb4] ss:$316 sps:$4 sm:$0xff]   ;;  %v5138_v33 = vld [vmem:[#allocation2 + $0xbc] ss:$316 sps:$4 sm:$0xff]  }
  0x3b   :  { %1338 = vmatprep.subr.bf16.mxu0 %v5045_v34  ;;  %1379 = vmatprep.subr.bf16.mxu1 %v5048_v35  ;;  %v5127_v30 = vld [vmem:[#allocation2 + $0x328] ss:$316 sps:$4 sm:$0xff]   ;;  %v5130_v31 = vld [vmem:[#allocation2 + $0x330] ss:$316 sps:$4 sm:$0xff]   ;;  %v5136_v35 = vld [vmem:[#allocation2 + $0xb8] ss:$316 sps:$4 sm:$0xff]  }
  0x3c   :  { %v5133_v34 = vld [vmem:[#allocation2 + $0xb0] ss:$316 sps:$4 sm:$0xff]  }
  0x3d   :  { %4943 = vmatmul.mubr.msk.bf16.vlgmr.msra.gmra.mxu0 %vm994_vm0, %v5316_v9  ;;  %4944 = vmatmul.mubr.msk.bf16.vlgmr.msra.gmra.mxu1 %vm994_vm0, %v5316_v9 }
  0x3e   :  { %1339 = vmatpush1.bf16.msra.mxu0 %v5043_v36  ;;  %1380 = vmatpush1.bf16.msra.mxu1 %v5046_v37  ;;  %v5141_v36 = vld [vmem:[#allocation2 + $0x33c] ss:$316 sps:$4 sm:$0xff]   ;;  %v5144_v37 = vld [vmem:[#allocation2 + $0x344] ss:$316 sps:$4 sm:$0xff]  }
  0x3f   :  { %1340 = vmatprep.subr.bf16.mxu0 %v5051_v38  ;;  %1381 = vmatprep.subr.bf16.mxu1 %v5054_v39  ;;  %v5139_v38 = vld [vmem:[#allocation2 + $0x338] ss:$316 sps:$4 sm:$0xff]   ;;  %v5142_v39 = vld [vmem:[#allocation2 + $0x340] ss:$316 sps:$4 sm:$0xff]  }
  0x40   :  { %1358 = vmatprep.mubr.bf16.mxu0 %v5282_v0  ;;  %1399 = vmatprep.mubr.bf16.mxu1 %v5282_v0 }
  0x42   :  { %1341 = vmatpush1.bf16.msra.mxu0 %v5049_v40  ;;  %1382 = vmatpush1.bf16.msra.mxu1 %v5052_v41  ;;  %v5147_v40 = vld [vmem:[#allocation2 + $0xc4] ss:$316 sps:$4 sm:$0xff]   ;;  %v5150_v41 = vld [vmem:[#allocation2 + $0xcc] ss:$316 sps:$4 sm:$0xff]  }
  0x43   :  { %1420 = vmatprep.subr.bf16.mxu0 %v5057_v42  ;;  %1461 = vmatprep.subr.bf16.mxu1 %v5060_v43  ;;  %v5145_v42 = vld [vmem:[#allocation2 + $0xc0] ss:$316 sps:$4 sm:$0xff]   ;;  %v5148_v43 = vld [vmem:[#allocation2 + $0xc8] ss:$316 sps:$4 sm:$0xff]  }
  0x45   :  { %4945 = vmatmul.mubr.msk.bf16.vlgmr.msra.gmra.mxu0 %vm994_vm0, %v5316_v9  ;;  %4946 = vmatmul.mubr.msk.bf16.vlgmr.msra.gmra.mxu1 %vm994_vm0, %v5316_v9 }
  0x46   :  { %1421 = vmatpush1.bf16.msra.mxu0 %v5055_v44  ;;  %1462 = vmatpush1.bf16.msra.mxu1 %v5058_v45  ;;  %v5153_v44 = vld [vmem:[#allocation2 + $0x34c] ss:$316 sps:$4 sm:$0xff]   ;;  %v5156_v45 = vld [vmem:[#allocation2 + $0x354] ss:$316 sps:$4 sm:$0xff]  }
  0x47   :  { %1422 = vmatprep.subr.bf16.mxu0 %v5063_v46  ;;  %1463 = vmatprep.subr.bf16.mxu1 %v5066_v47  ;;  %v5151_v46 = vld [vmem:[#allocation2 + $0x348] ss:$316 sps:$4 sm:$0xff]   ;;  %v5154_v47 = vld [vmem:[#allocation2 + $0x350] ss:$316 sps:$4 sm:$0xff]  }
  0x48   :  { %1440 = vmatprep.mubr.bf16.mxu0 %v5282_v0  ;;  %1481 = vmatprep.mubr.bf16.mxu1 %v5282_v0 }
  0x4a   :  { %1423 = vmatpush1.bf16.msra.mxu0 %v5061_v48  ;;  %1464 = vmatpush1.bf16.msra.mxu1 %v5064_v49  ;;  %v5159_v48 = vld [vmem:[#allocation2 + $0xd4] ss:$316 sps:$4 sm:$0xff]   ;;  %v5162_v49 = vld [vmem:[#allocation2 + $0xdc] ss:$316 sps:$4 sm:$0xff]  }
  0x4b   :  { %1502 = vmatprep.subr.bf16.mxu0 %v5069_v50  ;;  %1543 = vmatprep.subr.bf16.mxu1 %v5072_v51  ;;  %v5157_v50 = vld [vmem:[#allocation2 + $0xd0] ss:$316 sps:$4 sm:$0xff]   ;;  %v5160_v51 = vld [vmem:[#allocation2 + $0xd8] ss:$316 sps:$4 sm:$0xff]  }
  0x4d   :  { %4947 = vmatmul.mubr.msk.bf16.vlgmr.msra.gmra.mxu0 %vm994_vm0, %v5316_v9  ;;  %4948 = vmatmul.mubr.msk.bf16.vlgmr.msra.gmra.mxu1 %vm994_vm0, %v5316_v9 }
  0x4e   :  { %1503 = vmatpush1.bf16.msra.mxu0 %v5067_v52  ;;  %1544 = vmatpush1.bf16.msra.mxu1 %v5070_v53  ;;  %v5165_v52 = vld [vmem:[#allocation2 + $0x35c] ss:$316 sps:$4 sm:$0xff]   ;;  %v5168_v53 = vld [vmem:[#allocation2 + $0x364] ss:$316 sps:$4 sm:$0xff]  }
  0x4f   :  { %1504 = vmatprep.subr.bf16.mxu0 %v5075_v54  ;;  %1545 = vmatprep.subr.bf16.mxu1 %v5078_v55  ;;  %v5163_v54 = vld [vmem:[#allocation2 + $0x358] ss:$316 sps:$4 sm:$0xff]   ;;  %v5166_v55 = vld [vmem:[#allocation2 + $0x360] ss:$316 sps:$4 sm:$0xff]  }
  0x50   :  { %1522 = vmatprep.mubr.bf16.mxu0 %v5282_v0  ;;  %1563 = vmatprep.mubr.bf16.mxu1 %v5282_v0 }
  0x52   :  { %1505 = vmatpush1.bf16.msra.mxu0 %v5073_v56  ;;  %1546 = vmatpush1.bf16.msra.mxu1 %v5076_v57  ;;  %v5171_v56 = vld [vmem:[#allocation2 + $0xe4] ss:$316 sps:$4 sm:$0xff]   ;;  %v5174_v57 = vld [vmem:[#allocation2 + $0xec] ss:$316 sps:$4 sm:$0xff]  }
  0x53   :  { %1584 = vmatprep.subr.bf16.mxu0 %v5081_v58  ;;  %1625 = vmatprep.subr.bf16.mxu1 %v5084_v59  ;;  %v5169_v58 = vld [vmem:[#allocation2 + $0xe0] ss:$316 sps:$4 sm:$0xff]   ;;  %v5172_v59 = vld [vmem:[#allocation2 + $0xe8] ss:$316 sps:$4 sm:$0xff]  }
  0x55   :  { %4949 = vmatmul.mubr.msk.bf16.vlgmr.msra.gmra.mxu0 %vm994_vm0, %v5316_v9  ;;  %4950 = vmatmul.mubr.msk.bf16.vlgmr.msra.gmra.mxu1 %vm994_vm0, %v5316_v9 }
  0x56   :  { %1585 = vmatpush1.bf16.msra.mxu0 %v5079_v60  ;;  %1626 = vmatpush1.bf16.msra.mxu1 %v5082_v61  ;;  %v5177_v60 = vld [vmem:[#allocation2 + $0x36c] ss:$316 sps:$4 sm:$0xff]   ;;  %v5180_v61 = vld [vmem:[#allocation2 + $0x374] ss:$316 sps:$4 sm:$0xff]  }
  0x57   :  { %1586 = vmatprep.subr.bf16.mxu0 %v5087_v62  ;;  %1627 = vmatprep.subr.bf16.mxu1 %v5090_v63  ;;  %v5175_v62 = vld [vmem:[#allocation2 + $0x368] ss:$316 sps:$4 sm:$0xff]   ;;  %v5178_v63 = vld [vmem:[#allocation2 + $0x370] ss:$316 sps:$4 sm:$0xff]  }
  0x58   :  { %1604 = vmatprep.mubr.bf16.mxu0 %v5282_v0  ;;  %1645 = vmatprep.mubr.bf16.mxu1 %v5282_v0 }
  0x5a   :  { %1587 = vmatpush1.bf16.msra.mxu0 %v5085_v1  ;;  %1628 = vmatpush1.bf16.msra.mxu1 %v5088_v2  ;;  %v5183_v1 = vld [vmem:[#allocation2 + $0xf4] ss:$316 sps:$4 sm:$0xff]   ;;  %v5186_v2 = vld [vmem:[#allocation2 + $0xfc] ss:$316 sps:$4 sm:$0xff]  }
  0x5b   :  { %1666 = vmatprep.subr.bf16.mxu0 %v5093_v3  ;;  %1707 = vmatprep.subr.bf16.mxu1 %v5096_v4  ;;  %v5181_v3 = vld [vmem:[#allocation2 + $0xf0] ss:$316 sps:$4 sm:$0xff]   ;;  %v5184_v4 = vld [vmem:[#allocation2 + $0xf8] ss:$316 sps:$4 sm:$0xff]  }
  0x5d   :  { %4951 = vmatmul.mubr.msk.bf16.vlgmr.msra.gmra.mxu0 %vm994_vm0, %v5316_v9  ;;  %4952 = vmatmul.mubr.msk.bf16.vlgmr.msra.gmra.mxu1 %vm994_vm0, %v5316_v9 }
  0x5e   :  { %1667 = vmatpush1.bf16.msra.mxu0 %v5091_v5  ;;  %1708 = vmatpush1.bf16.msra.mxu1 %v5094_v6  ;;  %v5189_v5 = vld [vmem:[#allocation2 + $0x37c] ss:$316 sps:$4 sm:$0xff]   ;;  %v5192_v6 = vld [vmem:[#allocation2 + $0x384] ss:$316 sps:$4 sm:$0xff]  }
  0x5f   :  { %1668 = vmatprep.subr.bf16.mxu0 %v5099_v7  ;;  %1709 = vmatprep.subr.bf16.mxu1 %v5102_v8  ;;  %v5187_v7 = vld [vmem:[#allocation2 + $0x378] ss:$316 sps:$4 sm:$0xff]   ;;  %v5190_v8 = vld [vmem:[#allocation2 + $0x380] ss:$316 sps:$4 sm:$0xff]  }
  0x60   :  { %1686 = vmatprep.mubr.bf16.mxu0 %v5282_v0  ;;  %1727 = vmatprep.mubr.bf16.mxu1 %v5282_v0 }
  0x62   :  { %1669 = vmatpush1.bf16.msra.mxu0 %v5097_v10  ;;  %1710 = vmatpush1.bf16.msra.mxu1 %v5100_v11  ;;  %v5195_v10 = vld [vmem:[#allocation2 + $0x104] ss:$316 sps:$4 sm:$0xff]   ;;  %v5198_v11 = vld [vmem:[#allocation2 + $0x10c] ss:$316 sps:$4 sm:$0xff]  }
  0x63   :  { %1748 = vmatprep.subr.bf16.mxu0 %v5105_v12  ;;  %1789 = vmatprep.subr.bf16.mxu1 %v5108_v13  ;;  %v5193_v12 = vld [vmem:[#allocation2 + $0x100] ss:$316 sps:$4 sm:$0xff]   ;;  %v5196_v13 = vld [vmem:[#allocation2 + $0x108] ss:$316 sps:$4 sm:$0xff]  }
  0x65   :  { %4953 = vmatmul.mubr.msk.bf16.vlgmr.msra.gmra.mxu0 %vm994_vm0, %v5316_v9  ;;  %4954 = vmatmul.mubr.msk.bf16.vlgmr.msra.gmra.mxu1 %vm994_vm0, %v5316_v9 }
  0x66   :  { %1749 = vmatpush1.bf16.msra.mxu0 %v5103_v14  ;;  %1790 = vmatpush1.bf16.msra.mxu1 %v5106_v15  ;;  %v5201_v14 = vld [vmem:[#allocation2 + $0x38c] ss:$316 sps:$4 sm:$0xff]   ;;  %v5204_v15 = vld [vmem:[#allocation2 + $0x394] ss:$316 sps:$4 sm:$0xff]  }
  0x67   :  { %1750 = vmatprep.subr.bf16.mxu0 %v5111_v16  ;;  %1791 = vmatprep.subr.bf16.mxu1 %v5114_v17  ;;  %v5199_v16 = vld [vmem:[#allocation2 + $0x388] ss:$316 sps:$4 sm:$0xff]   ;;  %v5202_v17 = vld [vmem:[#allocation2 + $0x390] ss:$316 sps:$4 sm:$0xff]  }
  0x68   :  { %1768 = vmatprep.mubr.bf16.mxu0 %v5282_v0  ;;  %1809 = vmatprep.mubr.bf16.mxu1 %v5282_v0 }
  0x6a   :  { %1751 = vmatpush1.bf16.msra.mxu0 %v5109_v18  ;;  %1792 = vmatpush1.bf16.msra.mxu1 %v5112_v19  ;;  %v5207_v18 = vld [vmem:[#allocation2 + $0x114] ss:$316 sps:$4 sm:$0xff]   ;;  %v5210_v19 = vld [vmem:[#allocation2 + $0x11c] ss:$316 sps:$4 sm:$0xff]  }
  0x6b   :  { %1830 = vmatprep.subr.bf16.mxu0 %v5117_v20  ;;  %1871 = vmatprep.subr.bf16.mxu1 %v5120_v21  ;;  %v5205_v20 = vld [vmem:[#allocation2 + $0x110] ss:$316 sps:$4 sm:$0xff]   ;;  %v5208_v21 = vld [vmem:[#allocation2 + $0x118] ss:$316 sps:$4 sm:$0xff]  }
  0x6d   :  { %4955 = vmatmul.mubr.msk.bf16.vlgmr.msra.gmra.mxu0 %vm994_vm0, %v5316_v9  ;;  %4956 = vmatmul.mubr.msk.bf16.vlgmr.msra.gmra.mxu1 %vm994_vm0, %v5316_v9 }
  0x6e   :  { %1831 = vmatpush1.bf16.msra.mxu0 %v5115_v22  ;;  %1872 = vmatpush1.bf16.msra.mxu1 %v5118_v23  ;;  %v5213_v22 = vld [vmem:[#allocation2 + $0x39c] ss:$316 sps:$4 sm:$0xff]   ;;  %v5216_v23 = vld [vmem:[#allocation2 + $0x3a4] ss:$316 sps:$4 sm:$0xff]  }
  0x6f   :  { %1832 = vmatprep.subr.bf16.mxu0 %v5123_v24  ;;  %1873 = vmatprep.subr.bf16.mxu1 %v5126_v25  ;;  %v5211_v24 = vld [vmem:[#allocation2 + $0x398] ss:$316 sps:$4 sm:$0xff]   ;;  %v5214_v25 = vld [vmem:[#allocation2 + $0x3a0] ss:$316 sps:$4 sm:$0xff]  }
  0x70   :  { %1850 = vmatprep.mubr.bf16.mxu0 %v5282_v0  ;;  %1891 = vmatprep.mubr.bf16.mxu1 %v5282_v0 }
  0x72   :  { %1833 = vmatpush1.bf16.msra.mxu0 %v5121_v26  ;;  %1874 = vmatpush1.bf16.msra.mxu1 %v5124_v27  ;;  %v5219_v26 = vld [vmem:[#allocation2 + $0x124] ss:$316 sps:$4 sm:$0xff]   ;;  %v5222_v27 = vld [vmem:[#allocation2 + $0x12c] ss:$316 sps:$4 sm:$0xff]  }
  0x73   :  { %1912 = vmatprep.subr.bf16.mxu0 %v5129_v28  ;;  %1953 = vmatprep.subr.bf16.mxu1 %v5132_v29  ;;  %v5217_v28 = vld [vmem:[#allocation2 + $0x120] ss:$316 sps:$4 sm:$0xff]   ;;  %v5220_v29 = vld [vmem:[#allocation2 + $0x128] ss:$316 sps:$4 sm:$0xff]  }
  0x75   :  { %4957 = vmatmul.mubr.msk.bf16.vlgmr.msra.gmra.mxu0 %vm994_vm0, %v5316_v9  ;;  %4958 = vmatmul.mubr.msk.bf16.vlgmr.msra.gmra.mxu1 %vm994_vm0, %v5316_v9 }
  0x76   :  { %1913 = vmatpush1.bf16.msra.mxu0 %v5127_v30  ;;  %1954 = vmatpush1.bf16.msra.mxu1 %v5130_v31  ;;  %v5225_v30 = vld [vmem:[#allocation2 + $0x3ac] ss:$316 sps:$4 sm:$0xff]  }
  0x77   :  { %1914 = vmatprep.subr.bf16.mxu0 %v5135_v32  ;;  %1955 = vmatprep.subr.bf16.mxu1 %v5138_v33  ;;  %v5223_v31 = vld [vmem:[#allocation2 + $0x3a8] ss:$316 sps:$4 sm:$0xff]   ;;  %v5226_v32 = vld [vmem:[#allocation2 + $0x3b0] ss:$316 sps:$4 sm:$0xff]   ;;  %v5283_v33 = vmov 0.0  }
  0x78   :  { %1932 = vmatprep.mubr.bf16.mxu0 %v5282_v0  ;;  %1973 = vmatprep.mubr.bf16.mxu1 %v5282_v0 }
  0x7a   :  { %1915 = vmatpush1.bf16.msra.mxu0 %v5133_v34  ;;  %1956 = vmatpush1.bf16.msra.mxu1 %v5136_v35  ;;  %v5229_v34 = vld [vmem:[#allocation2 + $0x134] ss:$316 sps:$4 sm:$0xff]  }
  0x7b   :  { %1994 = vmatprep.subr.bf16.mxu0 %v5141_v36  ;;  %2035 = vmatprep.subr.bf16.mxu1 %v5144_v37  ;;  %v5227_v35 = vld [vmem:[#allocation2 + $0x130] ss:$316 sps:$4 sm:$0xff]   ;;  %v5230_v36 = vld [vmem:[#allocation2 + $0x138] ss:$316 sps:$4 sm:$0xff]   ;;  %v2824_v37 = vlaneseq }
  0x7d   :  { %4959 = vmatmul.mubr.msk.bf16.vlgmr.msra.gmra.mxu0 %vm994_vm0, %v5316_v9  ;;  %4960 = vmatmul.mubr.msk.bf16.vlgmr.msra.gmra.mxu1 %vm994_vm0, %v5316_v9 }
  0x7e   :  { %1995 = vmatpush1.bf16.msra.mxu0 %v5139_v38  ;;  %2036 = vmatpush1.bf16.msra.mxu1 %v5142_v39  ;;  %v2825_v38 = vshrl.u32 %v2824_v37, 7  ;;  %v5434_v39 = vld [vmem:[#allocation4 + $0x1] ss:$2 sm:$0xff] }
  0x7f   :  { %1996 = vmatprep.subr.bf16.mxu0 %v5147_v40  ;;  %2037 = vmatprep.subr.bf16.mxu1 %v5150_v41  ;;  %v5438_v41 = vld [vmem:[#allocation4] ss:$2 sm:$0xff] }
  0x80   :  { %2014 = vmatprep.mubr.bf16.mxu0 %v5282_v0  ;;  %2055 = vmatprep.mubr.bf16.mxu1 %v5282_v0  ;;  %v5436_v40 = vsub.s32 0, %v2825_v38 }
  0x82   :  { %1997 = vmatpush1.bf16.msra.mxu0 %v5145_v42  ;;  %2038 = vmatpush1.bf16.msra.mxu1 %v5148_v43  ;;  %v5440_v42 = vsub.s32 2, %v2825_v38  ;;  %v5442_v43 = vsub.s32 1, %v2825_v38 }
  0x83   :  { %2076 = vmatprep.subr.bf16.mxu0 %v5153_v44  ;;  %2117 = vmatprep.subr.bf16.mxu1 %v5156_v45  ;;  %v5447_v44 = vsub.s32 3, %v2825_v38  ;;  %v5449_v45 = vsub.s32 4, %v2825_v38 }
  0x85   :  { %4961 = vmatmul.mubr.msk.bf16.vlgmr.msra.gmra.mxu0 %vm994_vm0, %v5316_v9  ;;  %4962 = vmatmul.mubr.msk.bf16.vlgmr.msra.gmra.mxu1 %vm994_vm0, %v5316_v9 }
  0x86   :  { %2077 = vmatpush1.bf16.msra.mxu0 %v5151_v46  ;;  %2118 = vmatpush1.bf16.msra.mxu1 %v5154_v47  ;;  %v5451_v46 = vld [vmem:[#allocation4 + $0x11] ss:$2 sm:$0xff]  ;;  %v2827_v47 = vrot.slane %v5438_v41, %v5436_v40 }
  0x87   :  { %2078 = vmatprep.subr.bf16.mxu0 %v5159_v48  ;;  %2119 = vmatprep.subr.bf16.mxu1 %v5162_v49  ;;  %v5455_v48 = vsub.s32 6, %v2825_v38  ;;  %v5457_v49 = vsub.s32 5, %v2825_v38 }
  0x88   :  { %2096 = vmatprep.mubr.bf16.mxu0 %v5282_v0  ;;  %2137 = vmatprep.mubr.bf16.mxu1 %v5282_v0 }
  0x8a   :  { %2079 = vmatpush1.bf16.msra.mxu0 %v5157_v50  ;;  %2120 = vmatpush1.bf16.msra.mxu1 %v5160_v51  ;;  %v5459_v50 = vsub.s32 7, %v2825_v38  ;;  %v3815_v51 = vrot.slane %v5434_v39, %v5436_v40 }
  0x8b   :  { %2158 = vmatprep.subr.bf16.mxu0 %v5165_v52  ;;  %2199 = vmatprep.subr.bf16.mxu1 %v5168_v53  ;;  %v2835_v52 = vrot.slane %v5438_v41, %v5440_v42  ;;  %v3823_v53 = vrot.slane %v5434_v39, %v5440_v42 }
  0x8d   :  { %4963 = vmatmul.mubr.msk.bf16.vlgmr.msra.gmra.mxu0 %vm994_vm0, %v5316_v9  ;;  %4964 = vmatmul.mubr.msk.bf16.vlgmr.msra.gmra.mxu1 %vm994_vm0, %v5316_v9 }
  0x8e   :  { %2159 = vmatpush1.bf16.msra.mxu0 %v5163_v54  ;;  %2200 = vmatpush1.bf16.msra.mxu1 %v5166_v55  ;;  %v2831_v54 = vrot.slane %v5438_v41, %v5442_v43 }
  0x8f   :  { %2160 = vmatprep.subr.bf16.mxu0 %v5171_v56  ;;  %2201 = vmatprep.subr.bf16.mxu1 %v5174_v57 }
  0x90   :  { %2178 = vmatprep.mubr.bf16.mxu0 %v5282_v0  ;;  %2219 = vmatprep.mubr.bf16.mxu1 %v5282_v0 }
  0x92   :  { %2161 = vmatpush1.bf16.msra.mxu0 %v5169_v58  ;;  %2202 = vmatpush1.bf16.msra.mxu1 %v5172_v59  ;;  %v5476_v58 = vsub.f32 0.0, %v5451_v46 }
  0x93   :  { %2240 = vmatprep.subr.bf16.mxu0 %v5177_v60  ;;  %2281 = vmatprep.subr.bf16.mxu1 %v5180_v61  ;;  %v2839_v60 = vrot.slane %v5438_v41, %v5447_v44 }
  0x95   :  { %4965 = vmatmul.mubr.msk.bf16.vlgmr.msra.gmra.mxu0 %vm994_vm0, %v5316_v9  ;;  %4966 = vmatmul.mubr.msk.bf16.vlgmr.msra.gmra.mxu1 %vm994_vm0, %v5316_v9 }
  0x96   :  { %2241 = vmatpush1.bf16.msra.mxu0 %v5175_v62  ;;  %2282 = vmatpush1.bf16.msra.mxu1 %v5178_v63  ;;  %v2843_v63 = vrot.slane %v5438_v41, %v5449_v45 }
  0x97   :  { %2242 = vmatprep.subr.bf16.mxu0 %v5183_v1  ;;  %2283 = vmatprep.subr.bf16.mxu1 %v5186_v2 }
  0x98   :  { %2260 = vmatprep.mubr.bf16.mxu0 %v5282_v0  ;;  %2301 = vmatprep.mubr.bf16.mxu1 %v5282_v0 }
  0x9a   :  { %2243 = vmatpush1.bf16.msra.mxu0 %v5181_v3  ;;  %2284 = vmatpush1.bf16.msra.mxu1 %v5184_v4  ;;  %v2851_v3 = vrot.slane %v5438_v41, %v5455_v48  ;;  %v5494_v4 = vld [vmem:[#allocation4 + $0x10] ss:$2 sm:$0xff] }
  0x9b   :  { %2322 = vmatprep.subr.bf16.mxu0 %v5189_v5  ;;  %2363 = vmatprep.subr.bf16.mxu1 %v5192_v6 }
  0x9d   :  { %4967 = vmatmul.mubr.msk.bf16.vlgmr.msra.gmra.mxu0 %vm994_vm0, %v5316_v9  ;;  %4968 = vmatmul.mubr.msk.bf16.vlgmr.msra.gmra.mxu1 %vm994_vm0, %v5316_v9 }
  0x9e   :  { %2323 = vmatpush1.bf16.msra.mxu0 %v5187_v7  ;;  %2364 = vmatpush1.bf16.msra.mxu1 %v5190_v8  ;;  %v2847_v7 = vrot.slane %v5438_v41, %v5457_v49 }
  0x9f   :  { %2324 = vmatprep.subr.bf16.mxu0 %v5195_v10  ;;  %2365 = vmatprep.subr.bf16.mxu1 %v5198_v11  ;;  %v2855_v11 = vrot.slane %v5438_v41, %v5459_v50 }
  0xa0   :  { %2342 = vmatprep.mubr.bf16.mxu0 %v5282_v0  ;;  %2383 = vmatprep.mubr.bf16.mxu1 %v5282_v0 }
  0xa2   :  { %2325 = vmatpush1.bf16.msra.mxu0 %v5193_v12  ;;  %2366 = vmatpush1.bf16.msra.mxu1 %v5196_v13 }
  0xa3   :  { %2404 = vmatprep.subr.bf16.mxu0 %v5201_v14  ;;  %2445 = vmatprep.subr.bf16.mxu1 %v5204_v15 }
  0xa5   :  { %4969 = vmatmul.mubr.msk.bf16.vlgmr.msra.gmra.mxu0 %vm994_vm0, %v5316_v9  ;;  %4970 = vmatmul.mubr.msk.bf16.vlgmr.msra.gmra.mxu1 %vm994_vm0, %v5316_v9 }
  0xa6   :  { %2405 = vmatpush1.bf16.msra.mxu0 %v5199_v16  ;;  %2446 = vmatpush1.bf16.msra.mxu1 %v5202_v17  ;;  %v5778_v16 = vld [vmem:[#allocation4 + $0x60] ss:$2 sm:$0xff] }
  0xa7   :  { %2406 = vmatprep.subr.bf16.mxu0 %v5207_v18  ;;  %2447 = vmatprep.subr.bf16.mxu1 %v5210_v19  ;;  %v5695_v18 = vld [vmem:[#allocation4 + $0x50] ss:$2 sm:$0xff] }
  0xa8   :  { %2424 = vmatprep.mubr.bf16.mxu0 %v5282_v0  ;;  %2465 = vmatprep.mubr.bf16.mxu1 %v5282_v0 }
  0xaa   :  { %2407 = vmatpush1.bf16.msra.mxu0 %v5205_v20  ;;  %2448 = vmatpush1.bf16.msra.mxu1 %v5208_v21  ;;  %v5644_v21 = vld [vmem:[#allocation4 + $0x40] ss:$2 sm:$0xff] }
  0xab   :  { %2486 = vmatprep.subr.bf16.mxu0 %v5213_v22  ;;  %2527 = vmatprep.subr.bf16.mxu1 %v5216_v23  ;;  %v5528_v22 = vld [vmem:[#allocation4 + $0x20] ss:$2 sm:$0xff]  ;;  %v5530_v23 = vld [vmem:[#allocation4 + $0x21] ss:$2 sm:$0xff] }
  0xad   :  { %4971 = vmatmul.mubr.msk.bf16.vlgmr.msra.gmra.mxu0 %vm994_vm0, %v5316_v9  ;;  %4972 = vmatmul.mubr.msk.bf16.vlgmr.msra.gmra.mxu1 %vm994_vm0, %v5316_v9  ;;  %v5231_v9 = vld [vmem:[%s6613_s0] sm:$0xf] }
  0xae   :  { %2487 = vmatpush1.bf16.msra.mxu0 %v5211_v24  ;;  %2528 = vmatpush1.bf16.msra.mxu1 %v5214_v25  ;;  %v5634_v24 = vld [vmem:[#allocation4 + $0x41] ss:$2 sm:$0xff] }
  0xaf   :  { %2488 = vmatprep.subr.bf16.mxu0 %v5219_v26  ;;  %2529 = vmatprep.subr.bf16.mxu1 %v5222_v27  ;;  %v5581_v26 = vld [vmem:[#allocation4 + $0x31] ss:$2 sm:$0xff] }
  0xb0   :  { %2506 = vmatprep.mubr.bf16.mxu0 %v5282_v0  ;;  %2547 = vmatprep.mubr.bf16.mxu1 %v5282_v0  ;;  %v5608_v38 = vsub.f32 0.0, %v5581_v26 }
  0xb2   :  { %2489 = vmatpush1.bf16.msra.mxu0 %v5217_v28  ;;  %2530 = vmatpush1.bf16.msra.mxu1 %v5220_v29 }
  0xb3   :  { %2568 = vmatprep.subr.bf16.mxu0 %v5225_v30  ;;  %4980 = vmatprep.subr.bf16.mxu1 %v5283_v33 }
  0xb5   :  { %4973 = vmatmul.mubr.msk.bf16.vlgmr.msra.gmra.mxu0 %vm994_vm0, %v5231_v9  ;;  %4974 = vmatmul.mubr.msk.bf16.vlgmr.msra.gmra.mxu1 %vm994_vm0, %v5231_v9 }
  0xb6   :  { %2569 = vmatpush1.bf16.msra.mxu0 %v5223_v31  ;;  %4981 = vmatpush3.bf16.msra.mxu1 %v5226_v32  ;;  %v5697_v32 = vld [vmem:[#allocation4 + $0x51] ss:$2 sm:$0xff] }
  0xb7   :  { %2570 = vmatprep.subr.bf16.mxu0 %v5229_v34  ;;  %4982 = vmatprep.subr.bf16.mxu1 %v5283_v33  ;;  %v5553_v34 = vsub.f32 0.0, %v5530_v23  ;;  %v5720_v30 = vsub.f32 0.0, %v5697_v32 }
  0xb8   :  { %2588 = vmatprep.mubr.bf16.mxu0 %v5282_v0  ;;  %4984 = vmatprep.mubr.msk.bf16.mxu1 %vm5284_vm1, %v5283_v33  ;;  %v5445_v0 = vsub.f32 0.0, %v5434_v39  ;;  %v5591_v33 = vld [vmem:[#allocation4 + $0x30] ss:$2 sm:$0xff] }
  0xba   :  { %2571 = vmatpush1.bf16.msra.mxu0 %v5227_v35  ;;  %4983 = vmatpush3.bf16.msra.mxu1 %v5230_v36  ;;  %v4220_v55 = vrot.slane %v5445_v0, %v5436_v40  ;;  %v4228_v56 = vrot.slane %v5445_v0, %v5440_v42  ;;  %v4224_v59 = vrot.slane %v5445_v0, %v5442_v43  ;;  %v5661_v36 = vsub.f32 0.0, %v5634_v24 }
  0xbd   :  { %4975 = vmatmul.mubr.msk.bf16.vlgmr.msra.gmra.mxu0 %vm994_vm0, %v5231_v9  ;;  %4985 = vmatmul.mubr.msk.bf16.vlgmr.msra.gmra.mxu1 %vm994_vm0, %v5231_v9 }
  0xe5   :  { %v1032_v15 = vpop.f32.mrf.mxu0  ;;  %v1073_v31 = vpop.f32.mrf.mxu1 }
  0xe6   :  { %v2637_v29 = vmul.f32 0.31830987, %v1032_v15  ;;  %v2639_v28 = vmul.f32 0.31830987, %v1073_v31 }
  0xe7   :  { %v1034_v12 = vpop.f32.mrf.mxu0  ;;  %v1075_v13 = vpop.f32.mrf.mxu1 }
  0xe8   :  { %v3219_v31 = vadd.f32 %v2827_v47, %v2637_v29  ;;  %v2718_v9 = vfloor.f32 %v2639_v28  ;;  %v3221_v35 = vadd.f32 %v2835_v52, %v2639_v28  ;;  %v2638_v19 = vmul.f32 0.31830987, %v1034_v12 }
  0xe9   :  { %v2640_v37 = vmul.f32 0.31830987, %v1075_v13  ;;  %v1036_v8 = vpop.f32.mrf.mxu0  ;;  %v1077_v10 = vpop.f32.mrf.mxu1  ;;  %v2716_v25 = vfloor.f32 %v2637_v29 }
  0xea   :  { %v3298_v47 = vfloor.f32 %v3219_v31  ;;  %v3300_v20 = vfloor.f32 %v3221_v35  ;;  %v3220_v52 = vadd.f32 %v2831_v54, %v2638_v19  ;;  %v2717_v54 = vfloor.f32 %v2638_v19 }
  0xeb   :  { %v2719_v12 = vfloor.f32 %v2640_v37  ;;  %v3222_v8 = vadd.f32 %v2839_v60, %v2640_v37  ;;  %v1037_v10 = vpop.f32.mrf.mxu0  ;;  %v1078_v13 = vpop.f32.mrf.mxu1 }
  0xec   :  { %v3377_v29 = vsub.f32 %v2716_v25, %v3298_v47  ;;  %v3379_v31 = vsub.f32 %v2718_v9, %v3300_v20  ;;  %v3299_v27 = vfloor.f32 %v3220_v52 }
  0xed   :  { %v3301_v15 = vfloor.f32 %v3222_v8  ;;  %v1114_v6 = vpop.f32.mrf.mxu0  ;;  %v1155_v60 = vpop.f32.mrf.mxu1 }
  0xee   :  { %v3456_v10 = vmul.f32 0.5, %v3377_v29  ;;  %v3458_v13 = vmul.f32 0.5, %v3379_v31  ;;  %v2641_v25 = vmul.f32 0.31830987, %v1114_v6  ;;  %v2643_v20 = vmul.f32 0.31830987, %v1155_v60 }
  0xef   :  { %v3378_v9 = vsub.f32 %v2717_v54, %v3299_v27  ;;  %v3380_v47 = vsub.f32 %v2719_v12, %v3301_v15  ;;  %v1116_v28 = vpop.f32.mrf.mxu0  ;;  %v1157_v35 = vpop.f32.mrf.mxu1 }
  0xf0   :  { %v3535_v52 = vfloor.f32 %v3456_v10  ;;  %v3537_v8 = vfloor.f32 %v3458_v13  ;;  %v2720_v17 = vfloor.f32 %v2641_v25  ;;  %v3223_v37 = vadd.f32 %v2843_v63, %v2641_v25 }
  0xf1   :  { %v3457_v1 = vmul.f32 0.5, %v3378_v9  ;;  %v3459_v6 = vmul.f32 0.5, %v3380_v47  ;;  %v2722_v60 = vfloor.f32 %v2643_v20  ;;  %v3225_v27 = vadd.f32 %v2851_v3, %v2643_v20  ;;  %v1118_v15 = vpop.f32.mrf.mxu0  ;;  %v1159_v12 = vpop.f32.mrf.mxu1 }
  0xf2   :  { %v3614_v54 = vmul.f32 2.0, %v3535_v52  ;;  %v3616_v5 = vmul.f32 2.0, %v3537_v8  ;;  %v3302_v2 = vfloor.f32 %v3223_v37  ;;  %v2642_v19 = vmul.f32 0.31830987, %v1116_v28 }
  0xf3   :  { %v3536_v10 = vfloor.f32 %v3457_v1  ;;  %v3538_v13 = vfloor.f32 %v3459_v6  ;;  %v3304_v14 = vfloor.f32 %v3225_v27  ;;  %v2644_v61 = vmul.f32 0.31830987, %v1157_v35  ;;  %v1119_v62 = vpop.f32.mrf.mxu0  ;;  %v1160_v57 = vpop.f32.mrf.mxu1 }
  0xf4   :  { %vm3693_vm2 = vcmp.eq.f32.partialorder %v3614_v54, %v3377_v29  ;;  %vm3695_vm3 = vcmp.eq.f32.partialorder %v3616_v5, %v3379_v31  ;;  %v3381_v63 = vsub.f32 %v2720_v17, %v3302_v2  ;;  %v2721_v25 = vfloor.f32 %v2642_v19 }
  0xf5   :  { %v4612_v3 = vsel %vm3693_vm2, %v3815_v51, %v4220_v55  ;;  %v4614_v1 = vsel %vm3695_vm3, %v3823_v53, %v4228_v56  ;;  %v3615_v62 = vmul.f32 2.0, %v3536_v10  ;;  %v3617_v57 = vmul.f32 2.0, %v3538_v13  ;;  %v1196_v28 = vpop.f32.mrf.mxu0  ;;  %v1237_v5 = vpop.f32.mrf.mxu1 }
  0xf6   :  { %v3460_v2 = vmul.f32 0.5, %v3381_v63  ;;  %v3383_v17 = vsub.f32 %v2722_v60, %v3304_v14  ;;  %v3224_v29 = vadd.f32 %v2847_v7, %v2642_v19  ;;  %v2723_v31 = vfloor.f32 %v2644_v61 }
  0xf7   :  { %vm3694_vm4 = vcmp.eq.f32.partialorder %v3615_v62, %v3378_v9  ;;  %vm3696_vm5 = vcmp.eq.f32.partialorder %v3617_v57, %v3380_v47  ;;  %v3226_v51 = vadd.f32 %v2855_v11, %v2644_v61  ;;  %v2645_v55 = vmul.f32 0.31830987, %v1196_v28  ;;  %v1198_v35 = vpop.f32.mrf.mxu0  ;;  %v1239_v53 = vpop.f32.mrf.mxu1 }
  0xf8   :  { %v6617_v56 = vrot.slane %v5434_v39, %v5442_v43  ;;  %v6618_v7 = vrot.slane %v5445_v0, %v5447_v44  ;;  %v6619_v37 = vrot.slane %v5434_v39, %v5447_v44  ;;  %v3539_v9 = vfloor.f32 %v3460_v2 }
  0xf9   :  { %v3462_v41 = vmul.f32 0.5, %v3383_v17  ;;  %v3303_v11 = vfloor.f32 %v3224_v29  ;;  %v3305_v47 = vfloor.f32 %v3226_v51  ;;  %v2724_v19 = vfloor.f32 %v2645_v55  ;;  %v1200_v52 = vpop.f32.mrf.mxu0  ;;  %v1241_v8 = vpop.f32.mrf.mxu1 }
  0xfa   :  { %v4613_v14 = vsel %vm3694_vm4, %v6617_v56, %v4224_v59  ;;  %v4615_v20 = vsel %vm3696_vm5, %v6619_v37, %v6618_v7  ;;  %v3618_v6 = vmul.f32 2.0, %v3539_v9  ;;  %v6620_v59 = vrot.slane %v5494_v4, %v5436_v40 }
  0xfb   :  { %v4691_v61 = vadd.f32 %v4613_v14, %v4612_v3  ;;  %v3541_v60 = vfloor.f32 %v3462_v41  ;;  %v2647_v15 = vmul.f32 0.31830987, %v1237_v5  ;;  %v3382_v54 = vsub.f32 %v2721_v25, %v3303_v11  ;;  %v1201_v62 = vpop.f32.mrf.mxu0  ;;  %v1242_v57 = vpop.f32.mrf.mxu1 }
  0xfc   :  { %v3227_v27 = vadd.f32 %v6620_v59, %v2645_v55  ;;  %v3384_v10 = vsub.f32 %v2723_v31, %v3305_v47  ;;  %v2646_v13 = vmul.f32 0.31830987, %v1198_v35  ;;  %vm3697_vm6 = vcmp.eq.f32.partialorder %v3618_v6, %v3381_v63 }
  0xfd   :  { %v4692_v12 = vadd.f32 %v4691_v61, %v4614_v1  ;;  %v3620_v3 = vmul.f32 2.0, %v3541_v60  ;;  %v2726_v2 = vfloor.f32 %v2647_v15  ;;  %v6621_v51 = vrot.slane %v5445_v0, %v5449_v45  ;;  %v1278_v1 = vpop.f32.mrf.mxu0  ;;  %v1319_v25 = vpop.f32.mrf.mxu1 }
  0xfe   :  { %v3306_v28 = vfloor.f32 %v3227_v27  ;;  %v6622_v56 = vrot.slane %v5434_v39, %v5449_v45  ;;  %v3461_v55 = vmul.f32 0.5, %v3382_v54  ;;  %v3463_v5 = vmul.f32 0.5, %v3384_v10 }
  0xff   :  { %v4693_v29 = vadd.f32 %v4692_v12, %v4615_v20  ;;  %vm3699_vm7 = vcmp.eq.f32.partialorder %v3620_v3, %v3383_v17  ;;  %v6623_v63 = vrot.slane %v5494_v4, %v5440_v42  ;;  %v2725_v7 = vfloor.f32 %v2646_v13  ;;  %v1280_v47 = vpop.f32.mrf.mxu0  ;;  %v1321_v52 = vpop.f32.mrf.mxu1 }
 0x100   :  { %v4616_v14 = vsel %vm3697_vm6, %v6622_v56, %v6621_v51  ;;  %v3385_v31 = vsub.f32 %v2724_v19, %v3306_v28  ;;  %v6624_v20 = vrot.slane %v5445_v0, %v5455_v48  ;;  %v6625_v9 = vrot.slane %v5434_v39, %v5455_v48 }
 0x101   :  { %v3229_v35 = vadd.f32 %v6623_v63, %v2647_v15  ;;  %v4694_v37 = vadd.f32 %v4693_v29, %v4616_v14  ;;  %v3540_v61 = vfloor.f32 %v3461_v55  ;;  %v3542_v11 = vfloor.f32 %v3463_v5  ;;  %v1282_v62 = vpop.f32.mrf.mxu0  ;;  %v1323_v57 = vpop.f32.mrf.mxu1 }
 0x102   :  { %v4618_v41 = vsel %vm3699_vm7, %v6625_v9, %v6624_v20  ;;  %v3464_v8 = vmul.f32 0.5, %v3385_v31  ;;  %v6626_v19 = vrot.slane %v5494_v4, %v5442_v43  ;;  %v2648_v60 = vmul.f32 0.31830987, %v1239_v53 }
 0x103   :  { %v3308_v17 = vfloor.f32 %v3229_v35  ;;  %v3619_v59 = vmul.f32 2.0, %v3540_v61  ;;  %v3621_v27 = vmul.f32 2.0, %v3542_v11  ;;  %v2649_v15 = vmul.f32 0.31830987, %v1278_v1  ;;  %v1283_v5 = vpop.f32.mrf.mxu0 }
 0x104   :  { %v3228_v6 = vadd.f32 %v6626_v19, %v2646_v13  ;;  %v2651_v12 = vmul.f32 0.31830987, %v1319_v25  ;;  %v3543_v3 = vfloor.f32 %v3464_v8  ;;  %v2727_v51 = vfloor.f32 %v2648_v60  ;;  %v1324_v13 = vpop.f32.mrf.mxu1 }
 0x105   :  { %v3387_v28 = vsub.f32 %v2726_v2, %v3308_v17  ;;  %vm3698_vm8 = vcmp.eq.f32.partialorder %v3619_v59, %v3382_v54  ;;  %vm3700_vm9 = vcmp.eq.f32.partialorder %v3621_v27, %v3384_v10  ;;  %v6627_v56 = vrot.slane %v5494_v4, %v5447_v44  ;;  %v1360_v17 = vpop.f32.mrf.mxu0 }
 0x106   :  { %v3307_v29 = vfloor.f32 %v3228_v6  ;;  %v2728_v55 = vfloor.f32 %v2649_v15  ;;  %v6628_v53 = vrot.slane %v5445_v0, %v5457_v49  ;;  %v6629_v1 = vrot.slane %v5434_v39, %v5457_v49  ;;  %v1401_v19 = vpop.f32.mrf.mxu1 }
 0x107   :  { %v3230_v14 = vadd.f32 %v6627_v56, %v2648_v60  ;;  %v6630_v2 = vrot.slane %v5445_v0, %v5459_v50  ;;  %v6631_v54 = vrot.slane %v5434_v39, %v5459_v50  ;;  %v3622_v63 = vmul.f32 2.0, %v3543_v3 }
 0x108   :  { %v4617_v25 = vsel %vm3698_vm8, %v6629_v1, %v6628_v53  ;;  %v3466_v35 = vmul.f32 0.5, %v3387_v28  ;;  %v3386_v9 = vsub.f32 %v2725_v7, %v3307_v29  ;;  %v6632_v11 = vrot.slane %v5494_v4, %v5449_v45  ;;  %v5870_v3 = vpop.f32.mrf.mxu1 }
 0x109   :  { %v4619_v10 = vsel %vm3700_vm9, %v6631_v54, %v6630_v2  ;;  %v4695_v20 = vadd.f32 %v4694_v37, %v4617_v25  ;;  %v3309_v61 = vfloor.f32 %v3230_v14  ;;  %vm3701_vm10 = vcmp.eq.f32.partialorder %v3622_v63, %v3385_v31 }
 0x10a   :  { %v3231_v8 = vadd.f32 %v6632_v11, %v2649_v15  ;;  %v3545_v6 = vfloor.f32 %v3466_v35  ;;  %v2730_v60 = vfloor.f32 %v2651_v12  ;;  %v6633_v0 = vrot.slane %v5494_v4, %v5455_v48  ;;  %v1362_v15 = vpop.f32.mrf.mxu0  ;;  %v1405_v1 = vpop.f32.mrf.mxu1 }
 0x10b   :  { %v4696_v39 = vadd.f32 %v4695_v20, %v4618_v41  ;;  %v6634_v27 = vrot.slane %v5476_v58, %v5436_v40  ;;  %v6635_v7 = vrot.slane %v5451_v46, %v5436_v40  ;;  %v3465_v62 = vmul.f32 0.5, %v3386_v9 }
 0x10c   :  { %v3233_v59 = vadd.f32 %v6633_v0, %v2651_v12  ;;  %v3388_v57 = vsub.f32 %v2727_v51, %v3309_v61  ;;  %v3624_v31 = vmul.f32 2.0, %v3545_v6  ;;  %v3310_v29 = vfloor.f32 %v3231_v8  ;;  %v1364_v53 = vpop.f32.mrf.mxu0  ;;  %v1406_v11 = vpop.f32.mrf.mxu1 }
 0x10d   :  { %v4620_v37 = vsel %vm3701_vm10, %v6635_v7, %v6634_v27  ;;  %v2650_v14 = vmul.f32 0.31830987, %v1280_v47  ;;  %v4697_v5 = vadd.f32 %v4696_v39, %v4619_v10  ;;  %v3544_v13 = vfloor.f32 %v3465_v62 }
 0x10e   :  { %v3312_v56 = vfloor.f32 %v3233_v59  ;;  %v3467_v12 = vmul.f32 0.5, %v3388_v57  ;;  %v2652_v41 = vmul.f32 0.31830987, %v1321_v52  ;;  %vm3703_vm11 = vcmp.eq.f32.partialorder %v3624_v31, %v3387_v28  ;;  %v1365_v10 = vpop.f32.mrf.mxu0  ;;  %v1483_v7 = vpop.f32.mrf.mxu1 }
 0x10f   :  { %v3389_v25 = vsub.f32 %v2728_v55, %v3310_v29  ;;  %v2729_v54 = vfloor.f32 %v2650_v14  ;;  %v4698_v63 = vadd.f32 %v4697_v5, %v4620_v37  ;;  %v6636_v51 = vrot.slane %v5476_v58, %v5440_v42 }
 0x110   :  { %v3391_v2 = vsub.f32 %v2730_v60, %v3312_v56  ;;  %v6637_v35 = vrot.slane %v5451_v46, %v5440_v42  ;;  %v3623_v61 = vmul.f32 2.0, %v3544_v13  ;;  %v3546_v47 = vfloor.f32 %v3467_v12  ;;  %v1442_v27 = vpop.f32.mrf.mxu0 }
 0x111   :  { %v3468_v8 = vmul.f32 0.5, %v3389_v25  ;;  %v6638_v28 = vrot.slane %v5494_v4, %v5457_v49  ;;  %v2731_v6 = vfloor.f32 %v2652_v41  ;;  %v6639_v0 = vrot.slane %v5494_v4, %v5459_v50  ;;  %v5892_v4 = vpop.f32.mrf.mxu1 }
 0x112   :  { %v4622_v20 = vsel %vm3703_vm11, %v6637_v35, %v6636_v51  ;;  %v3470_v52 = vmul.f32 0.5, %v3391_v2  ;;  %vm3702_vm12 = vcmp.eq.f32.partialorder %v3623_v61, %v3386_v9  ;;  %v3625_v60 = vmul.f32 2.0, %v3546_v47  ;;  %v5890_v12 = vpop.f32.mrf.mxu0 }
 0x113   :  { %v3232_v55 = vadd.f32 %v6638_v28, %v2650_v14  ;;  %v3234_v59 = vadd.f32 %v6639_v0, %v2652_v41  ;;  %v2653_v39 = vmul.f32 0.31830987, %v1360_v17  ;;  %v6640_v37 = vrot.slane %v5476_v58, %v5442_v43 }
 0x114   :  { %v6641_v62 = vrot.slane %v5451_v46, %v5442_v43  ;;  %v3547_v29 = vfloor.f32 %v3468_v8  ;;  %v3549_v56 = vfloor.f32 %v3470_v52  ;;  %vm3704_vm13 = vcmp.eq.f32.partialorder %v3625_v60, %v3388_v57  ;;  %v1446_v11 = vpop.f32.mrf.mxu0  ;;  %v1487_v8 = vpop.f32.mrf.mxu1 }
 0x115   :  { %v3311_v14 = vfloor.f32 %v3232_v55  ;;  %v3313_v9 = vfloor.f32 %v3234_v59  ;;  %v2732_v13 = vfloor.f32 %v2653_v39  ;;  %v6642_v17 = vrot.slane %v5476_v58, %v5447_v44 }
 0x116   :  { %v4621_v31 = vsel %vm3702_vm12, %v6641_v62, %v6640_v37  ;;  %v6643_v41 = vrot.slane %v5451_v46, %v5447_v44  ;;  %v3626_v1 = vmul.f32 2.0, %v3547_v29  ;;  %v3628_v51 = vmul.f32 2.0, %v3549_v56 }
 0x117   :  { %v4699_v5 = vadd.f32 %v4698_v63, %v4621_v31  ;;  %v3390_v35 = vsub.f32 %v2729_v54, %v3311_v14  ;;  %v3392_v47 = vsub.f32 %v2731_v6, %v3313_v9  ;;  %v6644_v57 = vrot.slane %v5528_v22, %v5436_v40 }
 0x118   :  { %v4623_v53 = vsel %vm3704_vm13, %v6643_v41, %v6642_v17  ;;  %v2655_v10 = vmul.f32 0.31830987, %v1401_v19  ;;  %vm3705_vm14 = vcmp.eq.f32.partialorder %v3626_v1, %v3389_v25  ;;  %vm3707_vm15 = vcmp.eq.f32.partialorder %v3628_v51, %v3391_v2  ;;  %v1447_v25 = vpop.f32.mrf.mxu0  ;;  %v1488_v2 = vpop.f32.mrf.mxu1 }
 0x119   :  { %v4700_v61 = vadd.f32 %v4699_v5, %v4622_v20  ;;  %v3235_v63 = vadd.f32 %v6644_v57, %v2653_v39  ;;  %v3469_v52 = vmul.f32 0.5, %v3390_v35  ;;  %v2654_v28 = vmul.f32 0.31830987, %v1362_v15 }
 0x11a   :  { %v6645_v60 = vrot.slane %v5476_v58, %v5449_v45  ;;  %v6646_v54 = vrot.slane %v5451_v46, %v5449_v45  ;;  %v6647_v6 = vrot.slane %v5476_v58, %v5455_v48  ;;  %v6648_v19 = vrot.slane %v5451_v46, %v5455_v48  ;;  %v5921_v17 = vpop.f32.mrf.mxu0  ;;  %v5923_v41 = vpop.f32.mrf.mxu1 }
 0x11b   :  { %v4701_v55 = vadd.f32 %v4700_v61, %v4623_v53  ;;  %v3471_v59 = vmul.f32 0.5, %v3392_v47  ;;  %v3548_v39 = vfloor.f32 %v3469_v52  ;;  %v3314_v15 = vfloor.f32 %v3235_v63 }
 0x11c   :  { %v4624_v20 = vsel %vm3705_vm14, %v6646_v54, %v6645_v60  ;;  %v4626_v0 = vsel %vm3707_vm15, %v6648_v19, %v6647_v6  ;;  %v2734_v37 = vfloor.f32 %v2655_v10  ;;  %v6649_v62 = vrot.slane %v5528_v22, %v5440_v42  ;;  %v5926_v8 = vpop.f32.mrf.mxu0  ;;  %v5928_v52 = vpop.f32.mrf.mxu1 }
 0x11d   :  { %v4702_v29 = vadd.f32 %v4701_v55, %v4624_v20  ;;  %v3550_v56 = vfloor.f32 %v3471_v59  ;;  %v2733_v14 = vfloor.f32 %v2654_v28  ;;  %v6650_v5 = vrot.slane %v5528_v22, %v5442_v43 }
 0x11e   :  { %v3237_v31 = vadd.f32 %v6649_v62, %v2655_v10  ;;  %v3627_v53 = vmul.f32 2.0, %v3548_v39  ;;  %v3393_v1 = vsub.f32 %v2732_v13, %v3314_v15  ;;  %v2656_v61 = vmul.f32 0.31830987, %v5870_v3  ;;  %v1528_v6 = vpop.f32.mrf.mxu0  ;;  %v1569_v19 = vpop.f32.mrf.mxu1 }
 0x11f   :  { %v3236_v9 = vadd.f32 %v6650_v5, %v2654_v28  ;;  %v3629_v57 = vmul.f32 2.0, %v3550_v56  ;;  %v2657_v11 = vmul.f32 0.31830987, %v1442_v27  ;;  %v2659_v10 = vmul.f32 0.31830987, %v1483_v7 }
 0x120   :  { %v3316_v51 = vfloor.f32 %v3237_v31  ;;  %vm3706_vm0 = vcmp.eq.f32.partialorder %v3627_v53, %v3390_v35  ;;  %v3472_v55 = vmul.f32 0.5, %v3393_v1  ;;  %v2735_v60 = vfloor.f32 %v2656_v61  ;;  %v1570_v5 = vpop.f32.mrf.mxu1 }
 0x121   :  { %v3315_v63 = vfloor.f32 %v3236_v9  ;;  %v6651_v54 = vrot.slane %v5476_v58, %v5457_v49  ;;  %v6652_v13 = vrot.slane %v5451_v46, %v5457_v49  ;;  %vm3708_vm1 = vcmp.eq.f32.partialorder %v3629_v57, %v3392_v47 }
 0x122   :  { %v3395_v28 = vsub.f32 %v2734_v37, %v3316_v51  ;;  %v6653_v27 = vrot.slane %v5528_v22, %v5447_v44  ;;  %v6654_v35 = vrot.slane %v5476_v58, %v5459_v50  ;;  %v6655_v25 = vrot.slane %v5451_v46, %v5459_v50 }
 0x123   :  { %v4625_v20 = vsel %vm3706_vm0, %v6652_v13, %v6651_v54  ;;  %v3394_v3 = vsub.f32 %v2733_v14, %v3315_v63  ;;  %v3551_v39 = vfloor.f32 %v3472_v55  ;;  %v2736_v47 = vfloor.f32 %v2657_v11  ;;  %v1529_v14 = vpop.f32.mrf.mxu0  ;;  %v5953_v54 = vpop.f32.mrf.mxu1 }
 0x124   :  { %v3238_v7 = vadd.f32 %v6653_v27, %v2656_v61  ;;  %v4703_v59 = vadd.f32 %v4702_v29, %v4625_v20  ;;  %v4627_v2 = vsel %vm3708_vm1, %v6655_v25, %v6654_v35  ;;  %v3474_v15 = vmul.f32 0.5, %v3395_v28 }
 0x125   :  { %v3473_v37 = vmul.f32 0.5, %v3394_v3  ;;  %v6656_v31 = vrot.slane %v5528_v22, %v5449_v45  ;;  %v3630_v29 = vmul.f32 2.0, %v3551_v39  ;;  %v2738_v51 = vfloor.f32 %v2659_v10  ;;  %v5951_v55 = vpop.f32.mrf.mxu0 }
 0x126   :  { %v3317_v62 = vfloor.f32 %v3238_v7  ;;  %v4704_v9 = vadd.f32 %v4703_v59, %v4626_v0  ;;  %v3553_v53 = vfloor.f32 %v3474_v15  ;;  %v6657_v46 = vrot.slane %v5528_v22, %v5455_v48  ;;  %v5964_v59 = vpop.f32.mrf.mxu1 }
 0x127   :  { %v3239_v56 = vadd.f32 %v6656_v31, %v2657_v11  ;;  %v3552_v58 = vfloor.f32 %v3473_v37  ;;  %vm3709_vm2 = vcmp.eq.f32.partialorder %v3630_v29, %v3393_v1  ;;  %v2658_v20 = vmul.f32 0.31830987, %v5890_v12 }
 0x128   :  { %v3396_v61 = vsub.f32 %v2735_v60, %v3317_v62  ;;  %v3241_v63 = vadd.f32 %v6657_v46, %v2659_v10  ;;  %v4705_v13 = vadd.f32 %v4704_v9, %v4627_v2  ;;  %v3632_v11 = vmul.f32 2.0, %v3553_v53  ;;  %v5962_v10 = vpop.f32.mrf.mxu0 }
 0x129   :  { %v3318_v57 = vfloor.f32 %v3239_v56  ;;  %v6658_v0 = vrot.slane %v5553_v34, %v5436_v40  ;;  %v6659_v60 = vrot.slane %v5530_v23, %v5436_v40  ;;  %v3631_v7 = vmul.f32 2.0, %v3552_v58 }
 0x12a   :  { %v3475_v6 = vmul.f32 0.5, %v3396_v61  ;;  %vm3711_vm3 = vcmp.eq.f32.partialorder %v3632_v11, %v3395_v28  ;;  %v3320_v1 = vfloor.f32 %v3241_v63  ;;  %v2737_v25 = vfloor.f32 %v2658_v20  ;;  %v1610_v62 = vpop.f32.mrf.mxu0 }
 0x12b   :  { %v4628_v27 = vsel %vm3709_vm2, %v6659_v60, %v6658_v0  ;;  %v3397_v19 = vsub.f32 %v2736_v47, %v3318_v57  ;;  %v6660_v12 = vrot.slane %v5553_v34, %v5440_v42  ;;  %v6661_v2 = vrot.slane %v5530_v23, %v5440_v42  ;;  %v1651_v47 = vpop.f32.mrf.mxu1 }
 0x12c   :  { %v4706_v35 = vadd.f32 %v4705_v13, %v4628_v27  ;;  %vm3710_vm4 = vcmp.eq.f32.partialorder %v3631_v7, %v3394_v3  ;;  %v3554_v15 = vfloor.f32 %v3475_v6  ;;  %v6662_v31 = vrot.slane %v5553_v34, %v5442_v43  ;;  %v1611_v46 = vpop.f32.mrf.mxu0 }
 0x12d   :  { %v4630_v39 = vsel %vm3711_vm3, %v6661_v2, %v6660_v12  ;;  %v3476_v37 = vmul.f32 0.5, %v3397_v19  ;;  %v6663_v28 = vrot.slane %v5530_v23, %v5442_v43  ;;  %v3399_v14 = vsub.f32 %v2738_v51, %v3320_v1  ;;  %v1652_v63 = vpop.f32.mrf.mxu1 }
 0x12e   :  { %v6664_v5 = vrot.slane %v5528_v22, %v5457_v49  ;;  %v2660_v29 = vmul.f32 0.31830987, %v5892_v4  ;;  %v3633_v3 = vmul.f32 2.0, %v3554_v15  ;;  %v2661_v57 = vmul.f32 0.31830987, %v5921_v17  ;;  %v5986_v6 = vpop.f32.mrf.mxu0 }
 0x12f   :  { %v4629_v56 = vsel %vm3710_vm4, %v6663_v28, %v6662_v31  ;;  %v3555_v58 = vfloor.f32 %v3476_v37  ;;  %v3478_v13 = vmul.f32 0.5, %v3399_v14  ;;  %v6665_v60 = vrot.slane %v5528_v22, %v5459_v50  ;;  %v5988_v4 = vpop.f32.mrf.mxu1 }
 0x130   :  { %v3240_v9 = vadd.f32 %v6664_v5, %v2658_v20  ;;  %v4707_v53 = vadd.f32 %v4706_v35, %v4629_v56  ;;  %v2739_v0 = vfloor.f32 %v2660_v29  ;;  %vm3712_vm5 = vcmp.eq.f32.partialorder %v3633_v3, %v3396_v61  ;;  %v6000_v62 = vpop.f32.mrf.mxu0 }
 0x131   :  { %v3242_v51 = vadd.f32 %v6665_v60, %v2660_v29  ;;  %v3634_v7 = vmul.f32 2.0, %v3555_v58  ;;  %v2740_v20 = vfloor.f32 %v2661_v57  ;;  %v6666_v17 = vrot.slane %v5553_v34, %v5447_v44  ;;  %v6002_v47 = vpop.f32.mrf.mxu1 }
 0x132   :  { %v3319_v11 = vfloor.f32 %v3240_v9  ;;  %v4708_v27 = vadd.f32 %v4707_v53, %v4630_v39  ;;  %v6667_v35 = vrot.slane %v5530_v23, %v5447_v44  ;;  %v3557_v12 = vfloor.f32 %v3478_v13  ;;  %v1692_v58 = vpop.f32.mrf.mxu0 }
 0x133   :  { %v3321_v15 = vfloor.f32 %v3242_v51  ;;  %vm3713_vm6 = vcmp.eq.f32.partialorder %v3634_v7, %v3397_v19  ;;  %v6668_v61 = vrot.slane %v5591_v33, %v5436_v40  ;;  %v2663_v37 = vmul.f32 0.31830987, %v5923_v41 }
 0x134   :  { %v4631_v1 = vsel %vm3712_vm5, %v6667_v35, %v6666_v17  ;;  %v3398_v2 = vsub.f32 %v2737_v25, %v3319_v11  ;;  %v6669_v31 = vrot.slane %v5553_v34, %v5449_v45  ;;  %v6670_v28 = vrot.slane %v5530_v23, %v5449_v45  ;;  %v1693_v17 = vpop.f32.mrf.mxu0 }
 0x135   :  { %v4709_v22 = vadd.f32 %v4708_v27, %v4631_v1  ;;  %v3243_v39 = vadd.f32 %v6668_v61, %v2661_v57  ;;  %v3636_v56 = vmul.f32 2.0, %v3557_v12  ;;  %v3400_v19 = vsub.f32 %v2739_v0, %v3321_v15  ;;  %v1733_v57 = vpop.f32.mrf.mxu1 }
 0x136   :  { %v4632_v25 = vsel %vm3713_vm6, %v6670_v28, %v6669_v31  ;;  %v3477_v5 = vmul.f32 0.5, %v3398_v2  ;;  %v2742_v53 = vfloor.f32 %v2663_v37  ;;  %v6671_v41 = vrot.slane %v5591_v33, %v5440_v42 }
 0x137   :  { %v4710_v9 = vadd.f32 %v4709_v22, %v4632_v25  ;;  %v3322_v29 = vfloor.f32 %v3243_v39  ;;  %vm3715_vm7 = vcmp.eq.f32.partialorder %v3636_v56, %v3399_v14  ;;  %v3479_v63 = vmul.f32 0.5, %v3400_v19  ;;  %v1734_v35 = vpop.f32.mrf.mxu1 }
 0x138   :  { %v3245_v3 = vadd.f32 %v6671_v41, %v2663_v37  ;;  %v3556_v46 = vfloor.f32 %v3477_v5  ;;  %v2662_v13 = vmul.f32 0.31830987, %v5926_v8  ;;  %v6672_v11 = vrot.slane %v5553_v34, %v5455_v48 }
 0x139   :  { %v6673_v0 = vrot.slane %v5530_v23, %v5455_v48  ;;  %v3401_v51 = vsub.f32 %v2740_v20, %v3322_v29  ;;  %v2664_v7 = vmul.f32 0.31830987, %v5928_v52  ;;  %v3558_v12 = vfloor.f32 %v3479_v63  ;;  %v6027_v20 = vpop.f32.mrf.mxu0  ;;  %v6029_v28 = vpop.f32.mrf.mxu1 }
 0x13a   :  { %v3324_v27 = vfloor.f32 %v3245_v3  ;;  %v3635_v1 = vmul.f32 2.0, %v3556_v46  ;;  %v2741_v14 = vfloor.f32 %v2662_v13  ;;  %v6674_v15 = vrot.slane %v5591_v33, %v5442_v43 }
 0x13b   :  { %v4634_v60 = vsel %vm3715_vm7, %v6673_v0, %v6672_v11  ;;  %v3480_v22 = vmul.f32 0.5, %v3401_v51  ;;  %v2743_v39 = vfloor.f32 %v2664_v7  ;;  %v6675_v37 = vrot.slane %v5591_v33, %v5447_v44  ;;  %v6038_v57 = vpop.f32.mrf.mxu0  ;;  %v6040_v46 = vpop.f32.mrf.mxu1 }
 0x13c   :  { %v3244_v8 = vadd.f32 %v6674_v15, %v2662_v13  ;;  %v3403_v61 = vsub.f32 %v2742_v53, %v3324_v27  ;;  %vm3714_vm8 = vcmp.eq.f32.partialorder %v3635_v1, %v3398_v2  ;;  %v3637_v52 = vmul.f32 2.0, %v3558_v12 }
 0x13d   :  { %v3246_v31 = vadd.f32 %v6675_v37, %v2664_v7  ;;  %v2665_v56 = vmul.f32 0.31830987, %v5951_v55  ;;  %v6676_v5 = vrot.slane %v5553_v34, %v5457_v49  ;;  %v6677_v29 = vrot.slane %v5530_v23, %v5457_v49  ;;  %v1774_v35 = vpop.f32.mrf.mxu0  ;;  %v1815_v1 = vpop.f32.mrf.mxu1 }
 0x13e   :  { %v3323_v25 = vfloor.f32 %v3244_v8  ;;  %v3559_v41 = vfloor.f32 %v3480_v22  ;;  %v3482_v3 = vmul.f32 0.5, %v3403_v61  ;;  %vm3716_vm9 = vcmp.eq.f32.partialorder %v3637_v52, %v3400_v19 }
 0x13f   :  { %v4633_v53 = vsel %vm3714_vm8, %v6677_v29, %v6676_v5  ;;  %v3325_v58 = vfloor.f32 %v3246_v31  ;;  %v2744_v13 = vfloor.f32 %v2665_v56  ;;  %v6678_v55 = vrot.slane %v5553_v34, %v5459_v50  ;;  %v1816_v37 = vpop.f32.mrf.mxu1 }
 0x140   :  { %v4711_v63 = vadd.f32 %v4710_v9, %v4633_v53  ;;  %v3402_v2 = vsub.f32 %v2741_v14, %v3323_v25  ;;  %v6679_v11 = vrot.slane %v5530_v23, %v5459_v50  ;;  %v3638_v27 = vmul.f32 2.0, %v3559_v41  ;;  %v1775_v23 = vpop.f32.mrf.mxu0 }
 0x141   :  { %v3561_v7 = vfloor.f32 %v3482_v3  ;;  %v3404_v17 = vsub.f32 %v2743_v39, %v3325_v58  ;;  %v6680_v9 = vrot.slane %v5591_v33, %v5449_v45  ;;  %v2667_v14 = vmul.f32 0.31830987, %v5953_v54  ;;  %v6064_v53 = vpop.f32.mrf.mxu1 }
 0x142   :  { %v4635_v0 = vsel %vm3716_vm9, %v6679_v11, %v6678_v55  ;;  %v4712_v12 = vadd.f32 %v4711_v63, %v4634_v60  ;;  %v3481_v15 = vmul.f32 0.5, %v3402_v2  ;;  %vm3717_vm10 = vcmp.eq.f32.partialorder %v3638_v27, %v3401_v51 }
 0x143   :  { %v3247_v19 = vadd.f32 %v6680_v9, %v2665_v56  ;;  %v3640_v8 = vmul.f32 2.0, %v3561_v7  ;;  %v3483_v34 = vmul.f32 0.5, %v3404_v17  ;;  %v2666_v22 = vmul.f32 0.31830987, %v5962_v10  ;;  %v6062_v10 = vpop.f32.mrf.mxu0 }
 0x144   :  { %v4713_v31 = vadd.f32 %v4712_v12, %v4635_v0  ;;  %v6681_v39 = vrot.slane %v5608_v38, %v5436_v40  ;;  %v6682_v60 = vrot.slane %v5581_v26, %v5436_v40  ;;  %v3560_v25 = vfloor.f32 %v3481_v15  ;;  %v6077_v12 = vpop.f32.mrf.mxu1 }
 0x145   :  { %v3326_v5 = vfloor.f32 %v3247_v19  ;;  %vm3719_vm11 = vcmp.eq.f32.partialorder %v3640_v8, %v3403_v61  ;;  %v3562_v56 = vfloor.f32 %v3483_v34  ;;  %v2746_v54 = vfloor.f32 %v2667_v14  ;;  %v6075_v1 = vpop.f32.mrf.mxu0 }
 0x146   :  { %v4636_v52 = vsel %vm3717_vm10, %v6682_v60, %v6681_v39  ;;  %v6683_v51 = vrot.slane %v5591_v33, %v5455_v48  ;;  %v6684_v3 = vrot.slane %v5608_v38, %v5440_v42  ;;  %v6685_v58 = vrot.slane %v5581_v26, %v5440_v42  ;;  %v1897_v37 = vpop.f32.mrf.mxu1 }
 0x147   :  { %v4714_v41 = vadd.f32 %v4713_v31, %v4636_v52  ;;  %v3639_v55 = vmul.f32 2.0, %v3560_v25  ;;  %v3405_v61 = vsub.f32 %v2744_v13, %v3326_v5  ;;  %v3641_v11 = vmul.f32 2.0, %v3562_v56  ;;  %v1856_v23 = vpop.f32.mrf.mxu0 }
 0x148   :  { %v3249_v29 = vadd.f32 %v6683_v51, %v2667_v14  ;;  %v4638_v63 = vsel %vm3719_vm11, %v6685_v58, %v6684_v3  ;;  %v2745_v27 = vfloor.f32 %v2666_v22  ;;  %v6686_v7 = vrot.slane %v5591_v33, %v5457_v49  ;;  %v1898_v51 = vpop.f32.mrf.mxu1 }
 0x149   :  { %vm3718_vm12 = vcmp.eq.f32.partialorder %v3639_v55, %v3402_v2  ;;  %v3484_v15 = vmul.f32 0.5, %v3405_v61  ;;  %v2668_v9 = vmul.f32 0.31830987, %v5964_v59  ;;  %v2669_v19 = vmul.f32 0.31830987, %v5986_v6 }
 0x14a   :  { %v3328_v0 = vfloor.f32 %v3249_v29  ;;  %v3248_v35 = vadd.f32 %v6686_v7, %v2666_v22  ;;  %v6687_v13 = vrot.slane %v5608_v38, %v5442_v43  ;;  %v6688_v14 = vrot.slane %v5581_v26, %v5442_v43 }
 0x14b   :  { %vm3720_vm13 = vcmp.eq.f32.partialorder %v3641_v11, %v3404_v17  ;;  %v6689_v2 = vrot.slane %v5608_v38, %v5447_v44  ;;  %v6690_v59 = vrot.slane %v5581_v26, %v5447_v44  ;;  %v3563_v39 = vfloor.f32 %v3484_v15 }
 0x14c   :  { %v4637_v8 = vsel %vm3718_vm12, %v6688_v14, %v6687_v13  ;;  %v3407_v34 = vsub.f32 %v2746_v54, %v3328_v0  ;;  %v3327_v22 = vfloor.f32 %v3248_v35  ;;  %v2747_v60 = vfloor.f32 %v2668_v9  ;;  %v1857_v54 = vpop.f32.mrf.mxu0 }
 0x14d   :  { %v4715_v31 = vadd.f32 %v4714_v41, %v4637_v8  ;;  %v4639_v6 = vsel %vm3720_vm13, %v6690_v59, %v6689_v2  ;;  %v6691_v5 = vrot.slane %v5591_v33, %v5459_v50  ;;  %v2748_v56 = vfloor.f32 %v2669_v19  ;;  %v6103_v33 = vpop.f32.mrf.mxu1 }
 0x14e   :  { %v3486_v52 = vmul.f32 0.5, %v3407_v34  ;;  %v3406_v25 = vsub.f32 %v2745_v27, %v3327_v22  ;;  %v3642_v41 = vmul.f32 2.0, %v3563_v39  ;;  %v6692_v3 = vrot.slane %v5644_v21, %v5436_v40  ;;  %v6101_v35 = vpop.f32.mrf.mxu0 }
 0x14f   :  { %v3250_v17 = vadd.f32 %v6691_v5, %v2668_v9  ;;  %v4716_v29 = vadd.f32 %v4715_v31, %v4638_v63  ;;  %v2671_v55 = vmul.f32 0.31830987, %v5988_v4  ;;  %v2670_v27 = vmul.f32 0.31830987, %v6000_v62  ;;  %v6113_v62 = vpop.f32.mrf.mxu1 }
 0x150   :  { %v3251_v58 = vadd.f32 %v6692_v3, %v2669_v19  ;;  %v3565_v11 = vfloor.f32 %v3486_v52  ;;  %v3485_v0 = vmul.f32 0.5, %v3406_v25  ;;  %vm3721_vm14 = vcmp.eq.f32.partialorder %v3642_v41, %v3405_v61  ;;  %v6111_v23 = vpop.f32.mrf.mxu0 }
 0x151   :  { %v3329_v7 = vfloor.f32 %v3250_v17  ;;  %v4717_v15 = vadd.f32 %v4716_v29, %v4639_v6  ;;  %v2750_v63 = vfloor.f32 %v2671_v55  ;;  %v6693_v13 = vrot.slane %v5608_v38, %v5449_v45 }
 0x152   :  { %v3330_v9 = vfloor.f32 %v3251_v58  ;;  %v6694_v19 = vrot.slane %v5581_v26, %v5449_v45  ;;  %v3644_v14 = vmul.f32 2.0, %v3565_v11  ;;  %v3564_v8 = vfloor.f32 %v3485_v0  ;;  %v1938_v17 = vpop.f32.mrf.mxu0 }
 0x153   :  { %v3408_v22 = vsub.f32 %v2747_v60, %v3329_v7  ;;  %v6695_v61 = vrot.slane %v5644_v21, %v5440_v42  ;;  %v2749_v59 = vfloor.f32 %v2670_v27  ;;  %v6696_v52 = vrot.slane %v5644_v21, %v5442_v43  ;;  %v1979_v60 = vpop.f32.mrf.mxu1 }
 0x154   :  { %v4640_v4 = vsel %vm3721_vm14, %v6694_v19, %v6693_v13  ;;  %v3409_v31 = vsub.f32 %v2748_v56, %v3330_v9  ;;  %vm3723_vm15 = vcmp.eq.f32.partialorder %v3644_v14, %v3407_v34  ;;  %v3643_v6 = vmul.f32 2.0, %v3564_v8  ;;  %v1939_v11 = vpop.f32.mrf.mxu0 }
 0x155   :  { %v4718_v37 = vadd.f32 %v4717_v15, %v4640_v4  ;;  %v3253_v2 = vadd.f32 %v6695_v61, %v2671_v55  ;;  %v3487_v39 = vmul.f32 0.5, %v3408_v22  ;;  %v3252_v5 = vadd.f32 %v6696_v52, %v2670_v27  ;;  %v1980_v0 = vpop.f32.mrf.mxu1 }
 0x156   :  { %v6697_v54 = vrot.slane %v5608_v38, %v5455_v48  ;;  %v6698_v56 = vrot.slane %v5581_v26, %v5455_v48  ;;  %v3488_v29 = vmul.f32 0.5, %v3409_v31  ;;  %v2672_v3 = vmul.f32 0.31830987, %v6002_v47 }
 0x157   :  { %v3332_v41 = vfloor.f32 %v3253_v2  ;;  %vm3722_vm0 = vcmp.eq.f32.partialorder %v3643_v6, %v3406_v25  ;;  %v3566_v34 = vfloor.f32 %v3487_v39  ;;  %v3331_v58 = vfloor.f32 %v3252_v5  ;;  %v6140_v61 = vpop.f32.mrf.mxu1 }
 0x158   :  { %v4642_v51 = vsel %vm3723_vm15, %v6698_v56, %v6697_v54  ;;  %v2673_v55 = vmul.f32 0.31830987, %v6027_v20  ;;  %v6699_v7 = vrot.slane %v5608_v38, %v5457_v49  ;;  %v6700_v27 = vrot.slane %v5581_v26, %v5457_v49  ;;  %v6138_v20 = vpop.f32.mrf.mxu0 }
 0x159   :  { %v3567_v9 = vfloor.f32 %v3488_v29  ;;  %v3411_v13 = vsub.f32 %v2750_v63, %v3332_v41  ;;  %v2751_v19 = vfloor.f32 %v2672_v3  ;;  %v3645_v14 = vmul.f32 2.0, %v3566_v34  ;;  %v6147_v60 = vpop.f32.mrf.mxu1 }
 0x15a   :  { %v4641_v15 = vsel %vm3722_vm0, %v6700_v27, %v6699_v7  ;;  %v3410_v47 = vsub.f32 %v2749_v59, %v3331_v58  ;;  %v6701_v25 = vrot.slane %v5644_v21, %v5447_v44  ;;  %v2752_v39 = vfloor.f32 %v2673_v55  ;;  %v6145_v59 = vpop.f32.mrf.mxu0 }
 0x15b   :  { %v4719_v4 = vadd.f32 %v4718_v37, %v4641_v15  ;;  %v3646_v2 = vmul.f32 2.0, %v3567_v9  ;;  %v3490_v6 = vmul.f32 0.5, %v3411_v13  ;;  %v6702_v52 = vrot.slane %v5644_v21, %v5449_v45  ;;  %v2061_v7 = vpop.f32.mrf.mxu1 }
 0x15c   :  { %v3254_v8 = vadd.f32 %v6701_v25, %v2672_v3  ;;  %vm3724_vm1 = vcmp.eq.f32.partialorder %v3645_v14, %v3408_v22  ;;  %v3489_v37 = vmul.f32 0.5, %v3410_v47  ;;  %v6703_v54 = vrot.slane %v5608_v38, %v5459_v50  ;;  %v2020_v0 = vpop.f32.mrf.mxu0 }
 0x15d   :  { %v3255_v5 = vadd.f32 %v6702_v52, %v2673_v55  ;;  %v4720_v63 = vadd.f32 %v4719_v4, %v4642_v51  ;;  %v6704_v56 = vrot.slane %v5581_v26, %v5459_v50  ;;  %vm3725_vm2 = vcmp.eq.f32.partialorder %v3646_v2, %v3409_v31 }
 0x15e   :  { %v3333_v17 = vfloor.f32 %v3254_v8  ;;  %v3569_v41 = vfloor.f32 %v3490_v6  ;;  %v6705_v22 = vrot.slane %v5661_v36, %v5436_v40  ;;  %v6706_v51 = vrot.slane %v5634_v24, %v5436_v40  ;;  %v2021_v25 = vpop.f32.mrf.mxu0  ;;  %v2062_v8 = vpop.f32.mrf.mxu1 }
 0x15f   :  { %v4643_v29 = vsel %vm3724_vm1, %v6704_v56, %v6703_v54  ;;  %v3334_v3 = vfloor.f32 %v3255_v5  ;;  %v3568_v55 = vfloor.f32 %v3489_v37  ;;  %v2675_v26 = vmul.f32 0.31830987, %v6029_v28 }
 0x160   :  { %v4721_v34 = vadd.f32 %v4720_v63, %v4643_v29  ;;  %v4644_v58 = vsel %vm3725_vm2, %v6706_v51, %v6705_v22  ;;  %v3412_v11 = vsub.f32 %v2751_v19, %v3333_v17  ;;  %v3648_v38 = vmul.f32 2.0, %v3569_v41  ;;  %v6175_v37 = vpop.f32.mrf.mxu1 }
 0x161   :  { %v3413_v27 = vsub.f32 %v2752_v39, %v3334_v3  ;;  %v2674_v31 = vmul.f32 0.31830987, %v6038_v57  ;;  %v3647_v9 = vmul.f32 2.0, %v3568_v55  ;;  %v2676_v14 = vmul.f32 0.31830987, %v6040_v46  ;;  %v6173_v46 = vpop.f32.mrf.mxu0 }
 0x162   :  { %v4722_v15 = vadd.f32 %v4721_v34, %v4644_v58  ;;  %v3491_v4 = vmul.f32 0.5, %v3412_v11  ;;  %vm3727_vm3 = vcmp.eq.f32.partialorder %v3648_v38, %v3411_v13  ;;  %v2754_v6 = vfloor.f32 %v2675_v26  ;;  %v6191_v0 = vpop.f32.mrf.mxu1 }
 0x163   :  { %v3492_v2 = vmul.f32 0.5, %v3413_v27  ;;  %v6707_v19 = vrot.slane %v5644_v21, %v5455_v48  ;;  %v6708_v39 = vrot.slane %v5661_v36, %v5440_v42  ;;  %v6709_v28 = vrot.slane %v5634_v24, %v5440_v42  ;;  %v6189_v55 = vpop.f32.mrf.mxu0 }
 0x164   :  { %vm3726_vm4 = vcmp.eq.f32.partialorder %v3647_v9, %v3410_v47  ;;  %v3570_v5 = vfloor.f32 %v3491_v4  ;;  %v2753_v63 = vfloor.f32 %v2674_v31  ;;  %v6710_v13 = vrot.slane %v5661_v36, %v5442_v43  ;;  %v2143_v8 = vpop.f32.mrf.mxu1 }
 0x165   :  { %v3257_v52 = vadd.f32 %v6707_v19, %v2675_v26  ;;  %v4646_v57 = vsel %vm3727_vm3, %v6709_v28, %v6708_v39  ;;  %v6711_v17 = vrot.slane %v5634_v24, %v5442_v43  ;;  %v3571_v56 = vfloor.f32 %v3492_v2 }
 0x166   :  { %v6712_v41 = vrot.slane %v5644_v21, %v5457_v49  ;;  %v3649_v34 = vmul.f32 2.0, %v3570_v5  ;;  %v2755_v22 = vfloor.f32 %v2676_v14  ;;  %v6713_v51 = vrot.slane %v5644_v21, %v5459_v50  ;;  %v2144_v5 = vpop.f32.mrf.mxu1 }
 0x167   :  { %v4645_v54 = vsel %vm3726_vm4, %v6711_v17, %v6710_v13  ;;  %v3336_v29 = vfloor.f32 %v3257_v52  ;;  %v3650_v7 = vmul.f32 2.0, %v3571_v56  ;;  %v2677_v9 = vmul.f32 0.31830987, %v6062_v10 }
 0x168   :  { %v3256_v3 = vadd.f32 %v6712_v41, %v2674_v31  ;;  %v4723_v47 = vadd.f32 %v4722_v15, %v4645_v54  ;;  %v3258_v58 = vadd.f32 %v6713_v51, %v2676_v14  ;;  %vm3728_vm5 = vcmp.eq.f32.partialorder %v3649_v34, %v3412_v11  ;;  %v2102_v15 = vpop.f32.mrf.mxu0 }
 0x169   :  { %v3415_v38 = vsub.f32 %v2754_v6, %v3336_v29  ;;  %v2679_v31 = vmul.f32 0.31830987, %v6064_v53  ;;  %v6714_v21 = vrot.slane %v5661_v36, %v5447_v44  ;;  %v6715_v14 = vrot.slane %v5634_v24, %v5447_v44 }
 0x16a   :  { %v3335_v26 = vfloor.f32 %v3256_v3  ;;  %v4724_v4 = vadd.f32 %v4723_v47, %v4646_v57  ;;  %v3337_v25 = vfloor.f32 %v3258_v58  ;;  %vm3729_vm6 = vcmp.eq.f32.partialorder %v3650_v7, %v3413_v27  ;;  %v2103_v57 = vpop.f32.mrf.mxu0 }
 0x16b   :  { %v4647_v2 = vsel %vm3728_vm5, %v6715_v14, %v6714_v21  ;;  %v3494_v19 = vmul.f32 0.5, %v3415_v38  ;;  %v6716_v10 = vrot.slane %v5661_v36, %v5449_v45  ;;  %v6717_v11 = vrot.slane %v5634_v24, %v5449_v45 }
 0x16c   :  { %v3414_v6 = vsub.f32 %v2753_v63, %v3335_v26  ;;  %v4725_v52 = vadd.f32 %v4724_v4, %v4647_v2  ;;  %v3416_v39 = vsub.f32 %v2755_v22, %v3337_v25  ;;  %v2756_v28 = vfloor.f32 %v2677_v9  ;;  %v6214_v34 = vpop.f32.mrf.mxu0  ;;  %v6216_v22 = vpop.f32.mrf.mxu1 }
 0x16d   :  { %v4648_v53 = vsel %vm3729_vm6, %v6717_v11, %v6716_v10  ;;  %v3573_v13 = vfloor.f32 %v3494_v19  ;;  %v6718_v54 = vrot.slane %v5695_v18, %v5436_v40  ;;  %v2758_v56 = vfloor.f32 %v2679_v31 }
 0x16e   :  { %v3493_v17 = vmul.f32 0.5, %v3414_v6  ;;  %v4726_v63 = vadd.f32 %v4725_v52, %v4648_v53  ;;  %v3495_v29 = vmul.f32 0.5, %v3416_v39  ;;  %v6719_v41 = vrot.slane %v5695_v18, %v5440_v42  ;;  %v6222_v21 = vpop.f32.mrf.mxu0 }
 0x16f   :  { %v3259_v27 = vadd.f32 %v6718_v54, %v2677_v9  ;;  %v2678_v47 = vmul.f32 0.31830987, %v6075_v1  ;;  %v3652_v51 = vmul.f32 2.0, %v3573_v13  ;;  %v2680_v26 = vmul.f32 0.31830987, %v6077_v12 }
 0x170   :  { %v3261_v3 = vadd.f32 %v6719_v41, %v2679_v31  ;;  %v3572_v58 = vfloor.f32 %v3493_v17  ;;  %v3574_v4 = vfloor.f32 %v3495_v29  ;;  %v6720_v15 = vrot.slane %v5695_v18, %v5442_v43  ;;  %v6224_v31 = vpop.f32.mrf.mxu1  ;;  %v2184_v57 = vpop.f32.mrf.mxu0 }
 0x171   :  { %v3338_v7 = vfloor.f32 %v3259_v27  ;;  %v2757_v25 = vfloor.f32 %v2678_v47  ;;  %vm3731_vm7 = vcmp.eq.f32.partialorder %v3652_v51, %v3415_v38  ;;  %v2759_v2 = vfloor.f32 %v2680_v26 }
 0x172   :  { %v3340_v9 = vfloor.f32 %v3261_v3  ;;  %v3260_v8 = vadd.f32 %v6720_v15, %v2678_v47  ;;  %v3651_v1 = vmul.f32 2.0, %v3572_v58  ;;  %v6721_v19 = vrot.slane %v5661_v36, %v5455_v48  ;;  %v2225_v5 = vpop.f32.mrf.mxu1  ;;  %v2185_v3 = vpop.f32.mrf.mxu0 }
 0x173   :  { %v3417_v14 = vsub.f32 %v2756_v28, %v3338_v7  ;;  %v6722_v12 = vrot.slane %v5634_v24, %v5455_v48  ;;  %v3653_v10 = vmul.f32 2.0, %v3574_v4  ;;  %v6723_v38 = vrot.slane %v5695_v18, %v5447_v44 }
 0x174   :  { %v3419_v11 = vsub.f32 %v2758_v56, %v3340_v9  ;;  %v3339_v53 = vfloor.f32 %v3260_v8  ;;  %vm3730_vm8 = vcmp.eq.f32.partialorder %v3651_v1, %v3414_v6  ;;  %v2681_v28 = vmul.f32 0.31830987, %v6101_v35  ;;  %v2226_v47 = vpop.f32.mrf.mxu1 }
 0x175   :  { %v4650_v52 = vsel %vm3731_vm7, %v6722_v12, %v6721_v19  ;;  %v3496_v13 = vmul.f32 0.5, %v3417_v14  ;;  %v3262_v17 = vadd.f32 %v6723_v38, %v2680_v26  ;;  %v6724_v54 = vrot.slane %v5661_v36, %v5457_v49 }
 0x176   :  { %v6725_v27 = vrot.slane %v5634_v24, %v5457_v49  ;;  %vm3732_vm9 = vcmp.eq.f32.partialorder %v3653_v10, %v3416_v39  ;;  %v3498_v56 = vmul.f32 0.5, %v3419_v11  ;;  %v3418_v41 = vsub.f32 %v2757_v25, %v3339_v53  ;;  %v6251_v25 = vpop.f32.mrf.mxu0  ;;  %v6253_v1 = vpop.f32.mrf.mxu1 }
 0x177   :  { %v6726_v51 = vrot.slane %v5661_v36, %v5459_v50  ;;  %v6727_v58 = vrot.slane %v5634_v24, %v5459_v50  ;;  %v3575_v7 = vfloor.f32 %v3496_v13  ;;  %v3341_v26 = vfloor.f32 %v3262_v17 }
 0x178   :  { %v4649_v29 = vsel %vm3730_vm8, %v6725_v27, %v6724_v54  ;;  %v3577_v4 = vfloor.f32 %v3498_v56  ;;  %v3497_v9 = vmul.f32 0.5, %v3418_v41  ;;  %v2760_v15 = vfloor.f32 %v2681_v28  ;;  %v6257_v5 = vpop.f32.mrf.mxu0  ;;  %v6259_v13 = vpop.f32.mrf.mxu1 }
 0x179   :  { %v4727_v6 = vadd.f32 %v4726_v63, %v4649_v29  ;;  %v4651_v35 = vsel %vm3732_vm9, %v6727_v58, %v6726_v51  ;;  %v6728_v39 = vrot.slane %v5695_v18, %v5449_v45  ;;  %v3654_v19 = vmul.f32 2.0, %v3575_v7 }
 0x17a   :  { %v3420_v36 = vsub.f32 %v2759_v2, %v3341_v26  ;;  %v2683_v12 = vmul.f32 0.31830987, %v6103_v33  ;;  %v3656_v24 = vmul.f32 2.0, %v3577_v4  ;;  %v3576_v10 = vfloor.f32 %v3497_v9  ;;  %v2266_v29 = vpop.f32.mrf.mxu0  ;;  %v2307_v56 = vpop.f32.mrf.mxu1 }
 0x17b   :  { %v3263_v8 = vadd.f32 %v6728_v39, %v2681_v28  ;;  %v4728_v63 = vadd.f32 %v4727_v6, %v4650_v52  ;;  %v2682_v57 = vmul.f32 0.31830987, %v6111_v23  ;;  %vm3733_vm10 = vcmp.eq.f32.partialorder %v3654_v19, %v3417_v14  ;;  %v6261_v28 = vld [vmem:[#allocation4 + $0x51] ss:$2 sm:$0xff] }
 0x17c   :  { %v3499_v17 = vmul.f32 0.5, %v3420_v36  ;;  %v3999_v52 = vrot.slane %v6261_v28, %v5455_v48  ;;  %v6729_v33 = vrot.slane %v5720_v30, %v5436_v40  ;;  %v6730_v2 = vrot.slane %v5697_v32, %v5436_v40  ;;  %v2267_v9 = vpop.f32.mrf.mxu0 }
 0x17d   :  { %v3342_v53 = vfloor.f32 %v3263_v8  ;;  %v4729_v38 = vadd.f32 %v4728_v63, %v4651_v35  ;;  %vm3735_vm11 = vcmp.eq.f32.partialorder %v3656_v24, %v3419_v11  ;;  %v3655_v23 = vmul.f32 2.0, %v3576_v10 }
 0x17e   :  { %v4652_v54 = vsel %vm3733_vm10, %v6730_v2, %v6729_v33  ;;  %v3578_v14 = vfloor.f32 %v3499_v17  ;;  %v2762_v47 = vfloor.f32 %v2683_v12  ;;  %v6731_v6 = vrot.slane %v5695_v18, %v5455_v48  ;;  %v6290_v17 = vpop.f32.mrf.mxu0 }
 0x17f   :  { %v3421_v27 = vsub.f32 %v2760_v15, %v3342_v53  ;;  %v4730_v3 = vadd.f32 %v4729_v38, %v4652_v54  ;;  %v6732_v58 = vrot.slane %v5720_v30, %v5440_v42  ;;  %v6733_v35 = vrot.slane %v5697_v32, %v5440_v42  ;;  %v2308_v15 = vpop.f32.mrf.mxu1 }
 0x180   :  { %v3265_v51 = vadd.f32 %v6731_v6, %v2683_v12  ;;  %vm3734_vm12 = vcmp.eq.f32.partialorder %v3655_v23, %v3418_v41  ;;  %v6734_v26 = vrot.slane %v5695_v18, %v5457_v49  ;;  %v6735_v39 = vrot.slane %v5720_v30, %v5442_v43 }
 0x181   :  { %v4654_v7 = vsel %vm3735_vm11, %v6733_v35, %v6732_v58  ;;  %v3500_v11 = vmul.f32 0.5, %v3421_v27  ;;  %v6736_v8 = vrot.slane %v5697_v32, %v5442_v43  ;;  %v3657_v19 = vmul.f32 2.0, %v3578_v14  ;;  %v6292_v33 = vpop.f32.mrf.mxu1 }
 0x182   :  { %v3264_v4 = vadd.f32 %v6734_v26, %v2682_v57  ;;  %v3344_v12 = vfloor.f32 %v3265_v51  ;;  %v2684_v24 = vmul.f32 0.31830987, %v6113_v62  ;;  %v2761_v53 = vfloor.f32 %v2682_v57  ;;  %v6301_v57 = vpop.f32.mrf.mxu0 }
 0x183   :  { %v4653_v63 = vsel %vm3734_vm12, %v6736_v8, %v6735_v39  ;;  %v3579_v41 = vfloor.f32 %v3500_v11  ;;  %vm3736_vm13 = vcmp.eq.f32.partialorder %v3657_v19, %v3420_v36  ;;  %v6737_v23 = vrot.slane %v5695_v18, %v5459_v50  ;;  %v6303_v6 = vpop.f32.mrf.mxu1 }
 0x184   :  { %v4731_v10 = vadd.f32 %v4730_v3, %v4653_v63  ;;  %v3343_v38 = vfloor.f32 %v3264_v4  ;;  %v6294_v2 = vsub.f32 %v2762_v47, %v3344_v12  ;;  %v2763_v54 = vfloor.f32 %v2684_v24  ;;  %v2348_v4 = vpop.f32.mrf.mxu0  ;;  %v6323_v12 = vld [vmem:[#allocation4 + $0x61] ss:$2 sm:$0xff] }
 0x185   :  { %v3266_v29 = vadd.f32 %v6737_v23, %v2684_v24  ;;  %v3658_v14 = vmul.f32 2.0, %v3579_v41  ;;  %v4404_v62 = vrot.slane %v5720_v30, %v5455_v48  ;;  %v6738_v36 = vrot.slane %v5720_v30, %v5447_v44  ;;  %v2389_v9 = vpop.f32.mrf.mxu1 }
 0x186   :  { %v4732_v56 = vadd.f32 %v4731_v10, %v4654_v7  ;;  %v3422_v3 = vsub.f32 %v2761_v53, %v3343_v38  ;;  %v6739_v47 = vrot.slane %v5697_v32, %v5447_v44  ;;  %v3502_v18 = vmul.f32 0.5, %v6294_v2  ;;  %v2349_v38 = vpop.f32.mrf.mxu0 }
 0x187   :  { %v3345_v58 = vfloor.f32 %v3266_v29  ;;  %v2685_v35 = vmul.f32 0.31830987, %v6138_v20  ;;  %vm3737_vm14 = vcmp.eq.f32.partialorder %v3658_v14, %v3421_v27  ;;  %v3995_v26 = vrot.slane %v6261_v28, %v5457_v49  ;;  %v2390_v23 = vpop.f32.mrf.mxu1 }
 0x188   :  { %v4655_v51 = vsel %vm3736_vm13, %v6739_v47, %v6738_v36  ;;  %v3501_v11 = vmul.f32 0.5, %v3422_v3  ;;  %v6740_v15 = vrot.slane %v5720_v30, %v5449_v45  ;;  %v6741_v39 = vrot.slane %v5697_v32, %v5449_v45 }
 0x189   :  { %v4733_v7 = vadd.f32 %v4732_v56, %v4655_v51  ;;  %v3581_v63 = vfloor.f32 %v3502_v18  ;;  %v4400_v19 = vrot.slane %v5720_v30, %v5457_v49  ;;  %v3424_v20 = vsub.f32 %v2763_v54, %v3345_v58  ;;  %v6336_v18 = vpop.f32.mrf.mxu0  ;;  %v6338_v58 = vpop.f32.mrf.mxu1 }
 0x18a   :  { %v4656_v8 = vsel %vm3737_vm14, %v6741_v39, %v6740_v15  ;;  %v3580_v24 = vfloor.f32 %v3501_v11  ;;  %v4003_v10 = vrot.slane %v6261_v28, %v5459_v50  ;;  %v6742_v41 = vrot.slane %v5778_v16, %v5436_v40 }
 0x18b   :  { %v4734_v27 = vadd.f32 %v4733_v7, %v4656_v8  ;;  %v3660_v32 = vmul.f32 2.0, %v3581_v63  ;;  %v3503_v29 = vmul.f32 0.5, %v3424_v20  ;;  %v4408_v56 = vrot.slane %v5720_v30, %v5459_v50  ;;  %v6347_v15 = vpop.f32.mrf.mxu0  ;;  %v6349_v39 = vpop.f32.mrf.mxu1 }
 0x18c   :  { %v3267_v53 = vadd.f32 %v6742_v41, %v2685_v35  ;;  %v2687_v54 = vmul.f32 0.31830987, %v6140_v61  ;;  %v3659_v14 = vmul.f32 2.0, %v3580_v24  ;;  %v2764_v36 = vfloor.f32 %v2685_v35  ;;  %v6351_v41 = vld [vmem:[#allocation4 + $0x60] ss:$2 sm:$0xff] }
 0x18d   :  { %v6334_v51 = vsub.f32 0.0, %v6323_v12  ;;  %v3582_v7 = vfloor.f32 %v3503_v29  ;;  %v4007_v11 = vrot.slane %v6323_v12, %v5436_v40  ;;  %v6743_v30 = vrot.slane %v5778_v16, %v5440_v42  ;;  %v2430_v23 = vpop.f32.mrf.mxu0  ;;  %v2471_v29 = vpop.f32.mrf.mxu1 }
 0x18e   :  { %v3346_v47 = vfloor.f32 %v3267_v53  ;;  %v2766_v4 = vfloor.f32 %v2687_v54  ;;  %vm3739_vm15 = vcmp.eq.f32.partialorder %v3660_v32, %v6294_v2  ;;  %vm3738_vm0 = vcmp.eq.f32.partialorder %v3659_v14, %v3422_v3 }
 0x18f   :  { %v3269_v9 = vadd.f32 %v6743_v30, %v2687_v54  ;;  %v2686_v35 = vmul.f32 0.31830987, %v6145_v59  ;;  %v4657_v8 = vsel %vm3738_vm0, %v3995_v26, %v4400_v19  ;;  %v3661_v63 = vmul.f32 2.0, %v3582_v7  ;;  %v2431_v7 = vpop.f32.mrf.mxu0  ;;  %v2472_v30 = vpop.f32.mrf.mxu1 }
 0x190   :  { %v3425_v61 = vsub.f32 %v2764_v36, %v3346_v47  ;;  %v3023_v53 = vrot.slane %v6351_v41, %v5442_v43  ;;  %v4735_v16 = vadd.f32 %v4734_v27, %v4657_v8  ;;  %v4412_v3 = vrot.slane %v6334_v51, %v5436_v40 }
 0x191   :  { %v3348_v24 = vfloor.f32 %v3269_v9  ;;  %v4658_v26 = vsel %vm3739_vm15, %v3999_v52, %v4404_v62  ;;  %vm3740_vm1 = vcmp.eq.f32.partialorder %v3661_v63, %v3424_v20  ;;  %v2765_v36 = vfloor.f32 %v2686_v35  ;;  %v6369_v62 = vpop.f32.mrf.mxu0  ;;  %v6371_v20 = vpop.f32.mrf.mxu1 }
 0x192   :  { %v3504_v38 = vmul.f32 0.5, %v3425_v61  ;;  %v3268_v54 = vadd.f32 %v3023_v53, %v2686_v35  ;;  %v4736_v14 = vadd.f32 %v4735_v16, %v4658_v26  ;;  %v2688_v47 = vmul.f32 0.31830987, %v6147_v60 }
 0x193   :  { %v3427_v19 = vsub.f32 %v2766_v4, %v3348_v24  ;;  %v4659_v9 = vsel %vm3740_vm1, %v4003_v10, %v4408_v56  ;;  %v3031_v29 = vrot.slane %v6351_v41, %v5447_v44  ;;  %v4420_v52 = vrot.slane %v6334_v51, %v5440_v42  ;;  %v6380_v24 = vpop.f32.mrf.mxu0  ;;  %v6382_v53 = vpop.f32.mrf.mxu1 }
 0x194   :  { %v3583_v27 = vfloor.f32 %v3504_v38  ;;  %v3347_v23 = vfloor.f32 %v3268_v54  ;;  %v4737_v28 = vadd.f32 %v4736_v14, %v4659_v9  ;;  %v2767_v2 = vfloor.f32 %v2688_v47  ;;  %6744 = vst [vmem:[#allocation8_spill] sm:$0xff] %v6380_v24  ;;  %6745 = vst [vmem:[#allocation9_spill] sm:$0xff] %v6382_v53 }
 0x195   :  { %v3506_v8 = vmul.f32 0.5, %v3427_v19  ;;  %v3270_v4 = vadd.f32 %v3031_v29, %v2688_v47  ;;  %v2689_v10 = vmul.f32 0.31830987, %v6173_v46  ;;  %v4011_v56 = vrot.slane %v6323_v12, %v5442_v43 }
 0x196   :  { %v3662_v59 = vmul.f32 2.0, %v3583_v27  ;;  %v3426_v60 = vsub.f32 %v2765_v36, %v3347_v23  ;;  %v4416_v35 = vrot.slane %v6334_v51, %v5442_v43  ;;  %v3035_v63 = vrot.slane %v6351_v41, %v5449_v45  ;;  %v2512_v27 = vpop.f32.mrf.mxu0  ;;  %v2553_v36 = vpop.f32.mrf.mxu1 }
 0x197   :  { %v3585_v32 = vfloor.f32 %v3506_v8  ;;  %v3349_v54 = vfloor.f32 %v3270_v4  ;;  %v4019_v46 = vrot.slane %v6323_v12, %v5447_v44  ;;  %v4424_v30 = vrot.slane %v6334_v51, %v5447_v44 }
 0x198   :  { %vm3741_vm2 = vcmp.eq.f32.partialorder %v3662_v59, %v3425_v61  ;;  %v3505_v26 = vmul.f32 0.5, %v3426_v60  ;;  %v3271_v61 = vadd.f32 %v3035_v63, %v2689_v10  ;;  %v2691_v59 = vmul.f32 0.31830987, %v6175_v37  ;;  %v2513_v23 = vpop.f32.mrf.mxu0  ;;  %v2554_v29 = vpop.f32.mrf.mxu1 }
 0x199   :  { %v4660_v16 = vsel %vm3741_vm2, %v4007_v11, %v4412_v3  ;;  %v3664_v38 = vmul.f32 2.0, %v3585_v32  ;;  %v3428_v7 = vsub.f32 %v2767_v2, %v3349_v54  ;;  %v3043_v11 = vrot.slane %v6351_v41, %v5455_v48 }
 0x19a   :  { %v4738_v14 = vadd.f32 %v4737_v28, %v4660_v16  ;;  %v3584_v47 = vfloor.f32 %v3505_v26  ;;  %v2768_v3 = vfloor.f32 %v2689_v10  ;;  %v3350_v9 = vfloor.f32 %v3271_v61  ;;  %v6398_v10 = vpop.f32.mrf.mxu0  ;;  %v6400_v54 = vpop.f32.mrf.mxu1 }
 0x19b   :  { %vm3743_vm3 = vcmp.eq.f32.partialorder %v3664_v38, %v3427_v19  ;;  %v4023_v8 = vrot.slane %v6323_v12, %v5449_v45  ;;  %v3507_v37 = vmul.f32 0.5, %v3428_v7  ;;  %v2770_v32 = vfloor.f32 %v2691_v59  ;;  %6746 = vst [vmem:[#allocation10_spill] sm:$0xff] %v6398_v10  ;;  %6747 = vst [vmem:[#allocation11_spill] sm:$0xff] %v6400_v54 }
 0x19c   :  { %v3663_v28 = vmul.f32 2.0, %v3584_v47  ;;  %v3273_v4 = vadd.f32 %v3043_v11, %v2691_v59  ;;  %v3429_v63 = vsub.f32 %v2768_v3, %v3350_v9  ;;  %v4428_v2 = vrot.slane %v6334_v51, %v5449_v45  ;;  %v6408_v9 = vpop.f32.mrf.mxu0  ;;  %v4986_v23 = vpop.f32.mrf.mxu1 }
 0x19d   :  { %v2690_v16 = vmul.f32 0.31830987, %v6189_v55  ;;  %v3039_v26 = vrot.slane %v6351_v41, %v5457_v49  ;;  %v6748_v61 = vrot.slane %v6323_v12, %v5440_v42  ;;  %v3586_v59 = vfloor.f32 %v3507_v37 }
 0x19e   :  { %vm3742_vm4 = vcmp.eq.f32.partialorder %v3663_v28, %v3426_v60  ;;  %v3352_v36 = vfloor.f32 %v3273_v4  ;;  %v3508_v11 = vmul.f32 0.5, %v3429_v63  ;;  %v4031_v55 = vrot.slane %v6323_v12, %v5455_v48  ;;  %v6413_v4 = vld [vmem:[#allocation4 + $0x70] ss:$2 sm:$0xff] }
 0x19f   :  { %v4662_v27 = vsel %vm3743_vm3, %v6748_v61, %v4420_v52  ;;  %v4661_v47 = vsel %vm3742_vm4, %v4011_v56, %v4416_v35  ;;  %v3272_v3 = vadd.f32 %v3039_v26, %v2690_v16  ;;  %v3665_v10 = vmul.f32 2.0, %v3586_v59  ;;  %v2594_v56 = vpop.f32.mrf.mxu0  ;;  %v2634_v35 = vpop.f32.mrf.mxu1  ;;  %v6415_v59 = vld [vmem:[#allocation4 + $0x71] ss:$2 sm:$0xff] }
 0x1a0   :  { %v4739_v29 = vadd.f32 %v4738_v14, %v4661_v47  ;;  %v3431_v54 = vsub.f32 %v2770_v32, %v3352_v36  ;;  %v2692_v53 = vmul.f32 0.31830987, %v6191_v0  ;;  %v3587_v24 = vfloor.f32 %v3508_v11 }
 0x1a1   :  { %v2769_v19 = vfloor.f32 %v2690_v16  ;;  %v3351_v52 = vfloor.f32 %v3272_v3  ;;  %v3047_v60 = vrot.slane %v6351_v41, %v5459_v50  ;;  %vm3744_vm5 = vcmp.eq.f32.partialorder %v3665_v10, %v3428_v7  ;;  %v2595_v0 = vpop.f32.mrf.mxu0  ;;  %v4987_v16 = vpop.f32.mrf.mxu1 }
 0x1a2   :  { %v4740_v38 = vadd.f32 %v4739_v29, %v4662_v27  ;;  %v3510_v28 = vmul.f32 0.5, %v3431_v54  ;;  %v2771_v37 = vfloor.f32 %v2692_v53  ;;  %v4663_v26 = vsel %vm3744_vm5, %v4019_v46, %v4424_v30 }
 0x1a3   :  { %v3666_v14 = vmul.f32 2.0, %v3587_v24  ;;  %v3430_v61 = vsub.f32 %v2769_v19, %v3351_v52  ;;  %v3274_v32 = vadd.f32 %v3047_v60, %v2692_v53  ;;  %v4436_v41 = vrot.slane %v6334_v51, %v5455_v48 }
 0x1a4   :  { %v4741_v36 = vadd.f32 %v4740_v38, %v4663_v26  ;;  %v3589_v47 = vfloor.f32 %v3510_v28  ;;  %v2693_v7 = vmul.f32 0.31830987, %v6214_v34  ;;  %v3051_v46 = vrot.slane %v6413_v4, %v5436_v40 }
 0x1a5   :  { %vm3745_vm6 = vcmp.eq.f32.partialorder %v3666_v14, %v3429_v63  ;;  %v3509_v10 = vmul.f32 0.5, %v3430_v61  ;;  %v3353_v27 = vfloor.f32 %v3274_v32  ;;  %v4027_v53 = vrot.slane %v6323_v12, %v5457_v49 }
 0x1a6   :  { %v4664_v24 = vsel %vm3745_vm6, %v4023_v8, %v4428_v2  ;;  %v3668_v30 = vmul.f32 2.0, %v3589_v47  ;;  %v6425_v11 = vsub.f32 0.0, %v6415_v59  ;;  %v3275_v19 = vadd.f32 %v3051_v46, %v2693_v7 }
 0x1a7   :  { %v4742_v3 = vadd.f32 %v4741_v36, %v4664_v24  ;;  %v3588_v23 = vfloor.f32 %v3509_v10  ;;  %v3432_v29 = vsub.f32 %v2771_v37, %v3353_v27  ;;  %v4432_v34 = vrot.slane %v6334_v51, %v5457_v49 }
 0x1a8   :  { %v4035_v63 = vrot.slane %v6323_v12, %v5459_v50  ;;  %v4440_v8 = vrot.slane %v6334_v51, %v5459_v50  ;;  %v2695_v2 = vmul.f32 0.31830987, %v6216_v22  ;;  %v2772_v56 = vfloor.f32 %v2693_v7 }
 0x1a9   :  { %v3667_v52 = vmul.f32 2.0, %v3588_v23  ;;  %v3511_v60 = vmul.f32 0.5, %v3432_v29  ;;  %v3354_v35 = vfloor.f32 %v3275_v19  ;;  %vm3747_vm7 = vcmp.eq.f32.partialorder %v3668_v30, %v3431_v54 }
 0x1aa   :  { %v4039_v38 = vrot.slane %v6415_v59, %v5436_v40  ;;  %v4444_v28 = vrot.slane %v6425_v11, %v5436_v40  ;;  %v3059_v37 = vrot.slane %v6413_v4, %v5440_v42  ;;  %v2694_v51 = vmul.f32 0.31830987, %v6222_v21 }
 0x1ab   :  { %vm3746_vm8 = vcmp.eq.f32.partialorder %v3667_v52, %v3430_v61  ;;  %v3590_v26 = vfloor.f32 %v3511_v60  ;;  %v3433_v14 = vsub.f32 %v2772_v56, %v3354_v35  ;;  %v2774_v32 = vfloor.f32 %v2695_v2 }
 0x1ac   :  { %v4665_v22 = vsel %vm3746_vm8, %v4027_v53, %v4432_v34  ;;  %v3277_v0 = vadd.f32 %v3059_v37, %v2695_v2  ;;  %v3055_v54 = vrot.slane %v6413_v4, %v5442_v43  ;;  %v4666_v16 = vsel %vm3747_vm7, %v4031_v55, %v4436_v41 }
 0x1ad   :  { %v4743_v36 = vadd.f32 %v4742_v3, %v4665_v22  ;;  %v3669_v47 = vmul.f32 2.0, %v3590_v26  ;;  %v3512_v7 = vmul.f32 0.5, %v3433_v14  ;;  %v4047_v61 = vrot.slane %v6415_v59, %v5440_v42 }
 0x1ae   :  { %v3356_v10 = vfloor.f32 %v3277_v0  ;;  %v3276_v27 = vadd.f32 %v3055_v54, %v2694_v51  ;;  %v2696_v21 = vmul.f32 0.31830987, %v6224_v31  ;;  %v3063_v30 = vrot.slane %v6413_v4, %v5447_v44 }
 0x1af   :  { %vm3748_vm9 = vcmp.eq.f32.partialorder %v3669_v47, %v3432_v29  ;;  %v4744_v46 = vadd.f32 %v4743_v36, %v4666_v16  ;;  %v3591_v24 = vfloor.f32 %v3512_v7  ;;  %v2773_v12 = vfloor.f32 %v2694_v51 }
 0x1b0   :  { %v4667_v53 = vsel %vm3748_vm9, %v4035_v63, %v4440_v8  ;;  %v3435_v23 = vsub.f32 %v2774_v32, %v3356_v10  ;;  %v3355_v55 = vfloor.f32 %v3276_v27  ;;  %v2775_v19 = vfloor.f32 %v2696_v21 }
 0x1b1   :  { %v4745_v41 = vadd.f32 %v4744_v46, %v4667_v53  ;;  %v3670_v3 = vmul.f32 2.0, %v3591_v24  ;;  %v3278_v34 = vadd.f32 %v3063_v30, %v2696_v21  ;;  %v4452_v52 = vrot.slane %v6425_v11, %v5440_v42 }
 0x1b2   :  { %v3514_v2 = vmul.f32 0.5, %v3435_v23  ;;  %v3434_v60 = vsub.f32 %v2773_v12, %v3355_v55  ;;  %v2697_v31 = vmul.f32 0.31830987, %v6251_v25  ;;  %v4043_v29 = vrot.slane %v6415_v59, %v5442_v43 }
 0x1b3   :  { %vm3749_vm10 = vcmp.eq.f32.partialorder %v3670_v3, %v3433_v14  ;;  %v3357_v56 = vfloor.f32 %v3278_v34  ;;  %v3067_v63 = vrot.slane %v6413_v4, %v5449_v45  ;;  %v4448_v26 = vrot.slane %v6425_v11, %v5442_v43 }
 0x1b4   :  { %v4668_v8 = vsel %vm3749_vm10, %v4039_v38, %v4444_v28  ;;  %v3593_v35 = vfloor.f32 %v3514_v2  ;;  %v3513_v37 = vmul.f32 0.5, %v3434_v60  ;;  %v4051_v32 = vrot.slane %v6415_v59, %v5447_v44 }
 0x1b5   :  { %v4746_v51 = vadd.f32 %v4745_v41, %v4668_v8  ;;  %v3436_v22 = vsub.f32 %v2775_v19, %v3357_v56  ;;  %v3279_v25 = vadd.f32 %v3067_v63, %v2697_v31  ;;  %v2699_v54 = vmul.f32 0.31830987, %v6253_v1 }
 0x1b6   :  { %v3672_v14 = vmul.f32 2.0, %v3593_v35  ;;  %v3592_v0 = vfloor.f32 %v3513_v37  ;;  %v3075_v16 = vrot.slane %v6413_v4, %v5455_v48  ;;  %v4456_v38 = vrot.slane %v6425_v11, %v5447_v44  ;;  %v6479_v37 = vld [vmem:[#allocation4 + $0x80] ss:$2 sm:$0xff] }
 0x1b7   :  { %v3515_v36 = vmul.f32 0.5, %v3436_v22  ;;  %v2776_v28 = vfloor.f32 %v2697_v31  ;;  %v3358_v47 = vfloor.f32 %v3279_v25  ;;  %v4055_v10 = vrot.slane %v6415_v59, %v5449_v45 }
 0x1b8   :  { %v3671_v7 = vmul.f32 2.0, %v3592_v0  ;;  %v2778_v27 = vfloor.f32 %v2699_v54  ;;  %v3281_v21 = vadd.f32 %v3075_v16, %v2699_v54  ;;  %vm3751_vm11 = vcmp.eq.f32.partialorder %v3672_v14, %v3435_v23 }
 0x1b9   :  { %v3594_v46 = vfloor.f32 %v3515_v36  ;;  %v3437_v24 = vsub.f32 %v2776_v28, %v3358_v47  ;;  %v2698_v1 = vmul.f32 0.31830987, %v6257_v5  ;;  %v4460_v30 = vrot.slane %v6425_v11, %v5449_v45 }
 0x1ba   :  { %vm3750_vm12 = vcmp.eq.f32.partialorder %v3671_v7, %v3434_v60  ;;  %v3360_v53 = vfloor.f32 %v3281_v21  ;;  %v3071_v12 = vrot.slane %v6413_v4, %v5457_v49  ;;  %v4063_v19 = vrot.slane %v6415_v59, %v5455_v48 }
 0x1bb   :  { %v4669_v55 = vsel %vm3750_vm12, %v4043_v29, %v4448_v26  ;;  %v3673_v41 = vmul.f32 2.0, %v3594_v46  ;;  %v3516_v3 = vmul.f32 0.5, %v3437_v24  ;;  %v4670_v34 = vsel %vm3751_vm11, %v4047_v61, %v4452_v52 }
 0x1bc   :  { %v4747_v23 = vadd.f32 %v4746_v51, %v4669_v55  ;;  %v3439_v2 = vsub.f32 %v2778_v27, %v3360_v53  ;;  %v3280_v31 = vadd.f32 %v3071_v12, %v2698_v1  ;;  %v2700_v60 = vmul.f32 0.31830987, %v6259_v13  ;;  %v6483_v13 = vld [vmem:[#allocation4 + $0x81] ss:$2 sm:$0xff] }
 0x1bd   :  { %vm3752_vm13 = vcmp.eq.f32.partialorder %v3673_v41, %v3436_v22  ;;  %v3595_v5 = vfloor.f32 %v3516_v3  ;;  %v3079_v56 = vrot.slane %v6413_v4, %v5459_v50  ;;  %v2777_v35 = vfloor.f32 %v2698_v1 }
 0x1be   :  { %v4748_v63 = vadd.f32 %v4747_v23, %v4670_v34  ;;  %v3518_v8 = vmul.f32 0.5, %v3439_v2  ;;  %v3359_v29 = vfloor.f32 %v3280_v31  ;;  %v4671_v26 = vsel %vm3752_vm13, %v4051_v32, %v4456_v38 }
 0x1bf   :  { %v3674_v25 = vmul.f32 2.0, %v3595_v5  ;;  %v2779_v14 = vfloor.f32 %v2700_v60  ;;  %v3282_v61 = vadd.f32 %v3079_v56, %v2700_v60  ;;  %v4468_v22 = vrot.slane %v6425_v11, %v5455_v48 }
 0x1c0   :  { %v4749_v52 = vadd.f32 %v4748_v63, %v4671_v26  ;;  %v3597_v51 = vfloor.f32 %v3518_v8  ;;  %v3438_v0 = vsub.f32 %v2777_v35, %v3359_v29  ;;  %v2701_v54 = vmul.f32 0.31830987, %v6290_v17 }
 0x1c1   :  { %vm3753_vm14 = vcmp.eq.f32.partialorder %v3674_v25, %v3437_v24  ;;  %v3361_v4 = vfloor.f32 %v3282_v61  ;;  %v3083_v16 = vrot.slane %v6479_v37, %v5436_v40  ;;  %v4059_v28 = vrot.slane %v6415_v59, %v5457_v49 }
 0x1c2   :  { %v4672_v36 = vsel %vm3753_vm14, %v4055_v10, %v4460_v30  ;;  %v3676_v32 = vmul.f32 2.0, %v3597_v51  ;;  %v3517_v38 = vmul.f32 0.5, %v3438_v0  ;;  %v6491_v21 = vsub.f32 0.0, %v6483_v13 }
 0x1c3   :  { %v4750_v47 = vadd.f32 %v4749_v52, %v4672_v36  ;;  %v3440_v7 = vsub.f32 %v2779_v14, %v3361_v4  ;;  %v3283_v27 = vadd.f32 %v3083_v16, %v2701_v54  ;;  %v4464_v24 = vrot.slane %v6425_v11, %v5457_v49 }
 0x1c4   :  { %v3596_v46 = vfloor.f32 %v3517_v38  ;;  %v4067_v17 = vrot.slane %v6415_v59, %v5459_v50  ;;  %v4472_v10 = vrot.slane %v6425_v11, %v5459_v50  ;;  %v2780_v30 = vfloor.f32 %v2701_v54 }
 0x1c5   :  { %v3519_v1 = vmul.f32 0.5, %v3440_v7  ;;  %v3362_v53 = vfloor.f32 %v3283_v27  ;;  %v2703_v12 = vmul.f32 0.31830987, %v6292_v33  ;;  %vm3755_vm15 = vcmp.eq.f32.partialorder %v3676_v32, %v3439_v2 }
 0x1c6   :  { %v3675_v55 = vmul.f32 2.0, %v3596_v46  ;;  %v4071_v41 = vrot.slane %v6483_v13, %v5436_v40  ;;  %v3091_v3 = vrot.slane %v6479_v37, %v5440_v42  ;;  %v4476_v59 = vrot.slane %v6491_v21, %v5436_v40 }
 0x1c7   :  { %v3598_v34 = vfloor.f32 %v3519_v1  ;;  %v3441_v23 = vsub.f32 %v2780_v30, %v3362_v53  ;;  %v2702_v11 = vmul.f32 0.31830987, %v6301_v57  ;;  %v2782_v31 = vfloor.f32 %v2703_v12 }
 0x1c8   :  { %vm3754_vm0 = vcmp.eq.f32.partialorder %v3675_v55, %v3438_v0  ;;  %v3285_v5 = vadd.f32 %v3091_v3, %v2703_v12  ;;  %v3087_v33 = vrot.slane %v6479_v37, %v5442_v43  ;;  %v4674_v2 = vsel %vm3755_vm15, %v4063_v19, %v4468_v22 }
 0x1c9   :  { %v4673_v60 = vsel %vm3754_vm0, %v4059_v28, %v4464_v24  ;;  %v3677_v56 = vmul.f32 2.0, %v3598_v34  ;;  %v3520_v63 = vmul.f32 0.5, %v3441_v23  ;;  %v4079_v29 = vrot.slane %v6483_v13, %v5440_v42 }
 0x1ca   :  { %v4751_v8 = vadd.f32 %v4750_v47, %v4673_v60  ;;  %v3364_v35 = vfloor.f32 %v3285_v5  ;;  %v3284_v26 = vadd.f32 %v3087_v33, %v2702_v11  ;;  %v2704_v57 = vmul.f32 0.31830987, %v6303_v6 }
 0x1cb   :  { %vm3756_vm1 = vcmp.eq.f32.partialorder %v3677_v56, %v3440_v7  ;;  %v3599_v25 = vfloor.f32 %v3520_v63  ;;  %v3095_v14 = vrot.slane %v6479_v37, %v5447_v44  ;;  %v2781_v51 = vfloor.f32 %v2702_v11 }
 0x1cc   :  { %v4752_v61 = vadd.f32 %v4751_v8, %v4674_v2  ;;  %v3443_v52 = vsub.f32 %v2782_v31, %v3364_v35  ;;  %v3363_v19 = vfloor.f32 %v3284_v26  ;;  %v4675_v22 = vsel %vm3756_vm1, %v4067_v17, %v4472_v10 }
 0x1cd   :  { %v3678_v0 = vmul.f32 2.0, %v3599_v25  ;;  %v2783_v4 = vfloor.f32 %v2704_v57  ;;  %v3286_v54 = vadd.f32 %v3095_v14, %v2704_v57  ;;  %v4484_v32 = vrot.slane %v6491_v21, %v5440_v42 }
 0x1ce   :  { %v4753_v16 = vadd.f32 %v4752_v61, %v4675_v22  ;;  %v3522_v36 = vmul.f32 0.5, %v3443_v52  ;;  %v3442_v38 = vsub.f32 %v2781_v51, %v3363_v19  ;;  %v2705_v6 = vmul.f32 0.31830987, %v6336_v18 }
 0x1cf   :  { %vm3757_vm2 = vcmp.eq.f32.partialorder %v3678_v0, %v3441_v23  ;;  %v3365_v28 = vfloor.f32 %v3286_v54  ;;  %v3099_v47 = vrot.slane %v6479_v37, %v5449_v45  ;;  %v4075_v24 = vrot.slane %v6483_v13, %v5442_v43 }
 0x1d0   :  { %v4676_v7 = vsel %vm3757_vm2, %v4071_v41, %v4476_v59  ;;  %v3601_v27 = vfloor.f32 %v3522_v36  ;;  %v3521_v46 = vmul.f32 0.5, %v3442_v38  ;;  %v4480_v10 = vrot.slane %v6491_v21, %v5442_v43  ;;  %v6543_v36 = vld [vmem:[#allocation4 + $0x90] ss:$2 sm:$0xff] }
 0x1d1   :  { %v4754_v17 = vadd.f32 %v4753_v16, %v4676_v7  ;;  %v3444_v1 = vsub.f32 %v2783_v4, %v3365_v28  ;;  %v3287_v30 = vadd.f32 %v3099_v47, %v2705_v6  ;;  %v4083_v18 = vrot.slane %v6483_v13, %v5447_v44 }
 0x1d2   :  { %v3680_v53 = vmul.f32 2.0, %v3601_v27  ;;  %v3600_v12 = vfloor.f32 %v3521_v46  ;;  %v2707_v55 = vmul.f32 0.31830987, %v6338_v58  ;;  %v2784_v41 = vfloor.f32 %v2705_v6 }
 0x1d3   :  { %v3523_v3 = vmul.f32 0.5, %v3444_v1  ;;  %v3366_v34 = vfloor.f32 %v3287_v30  ;;  %v3107_v23 = vrot.slane %v6479_v37, %v5455_v48  ;;  %v4488_v11 = vrot.slane %v6491_v21, %v5447_v44 }
 0x1d4   :  { %vm3759_vm3 = vcmp.eq.f32.partialorder %v3680_v53, %v3443_v52  ;;  %v3679_v59 = vmul.f32 2.0, %v3600_v12  ;;  %v4087_v31 = vrot.slane %v6483_v13, %v5449_v45  ;;  %v2786_v2 = vfloor.f32 %v2707_v55 }
 0x1d5   :  { %v3602_v5 = vfloor.f32 %v3523_v3  ;;  %v3445_v33 = vsub.f32 %v2784_v41, %v3366_v34  ;;  %v3289_v60 = vadd.f32 %v3107_v23, %v2707_v55  ;;  %v4492_v58 = vrot.slane %v6491_v21, %v5449_v45 }
 0x1d6   :  { %vm3758_vm4 = vcmp.eq.f32.partialorder %v3679_v59, %v3442_v38  ;;  %v2706_v56 = vmul.f32 0.31830987, %v6347_v15  ;;  %v3103_v63 = vrot.slane %v6479_v37, %v5457_v49  ;;  %v4678_v57 = vsel %vm3759_vm3, %v4079_v29, %v4484_v32 }
 0x1d7   :  { %v4677_v8 = vsel %vm3758_vm4, %v4075_v24, %v4480_v10  ;;  %v3681_v35 = vmul.f32 2.0, %v3602_v5  ;;  %v3524_v26 = vmul.f32 0.5, %v3445_v33  ;;  %v3368_v25 = vfloor.f32 %v3289_v60 }
 0x1d8   :  { %v4755_v14 = vadd.f32 %v4754_v17, %v4677_v8  ;;  %v4095_v61 = vrot.slane %v6483_v13, %v5455_v48  ;;  %v3288_v51 = vadd.f32 %v3103_v63, %v2706_v56  ;;  %v2708_v0 = vmul.f32 0.31830987, %v6349_v39  ;;  %v6749_v63 = vld [vmem:[#allocation8_spill] sm:$0xff] }
 0x1d9   :  { %vm3760_vm5 = vcmp.eq.f32.partialorder %v3681_v35, %v3444_v1  ;;  %v3603_v19 = vfloor.f32 %v3524_v26  ;;  %v3447_v22 = vsub.f32 %v2786_v2, %v3368_v25  ;;  %v2785_v4 = vfloor.f32 %v2706_v56 }
 0x1da   :  { %v4756_v15 = vadd.f32 %v4755_v14, %v4678_v57  ;;  %v3367_v54 = vfloor.f32 %v3288_v51  ;;  %v3111_v16 = vrot.slane %v6479_v37, %v5459_v50  ;;  %v4679_v52 = vsel %vm3760_vm5, %v4083_v18, %v4488_v11  ;;  %v6550_v37 = vld [vmem:[#allocation4 + $0x91] ss:$2 sm:$0xff] }
 0x1db   :  { %v3682_v29 = vmul.f32 2.0, %v3603_v19  ;;  %v3526_v32 = vmul.f32 0.5, %v3447_v22  ;;  %v4500_v38 = vrot.slane %v6491_v21, %v5455_v48  ;;  %v2787_v47 = vfloor.f32 %v2708_v0 }
 0x1dc   :  { %v4757_v28 = vadd.f32 %v4756_v15, %v4679_v52  ;;  %v3446_v6 = vsub.f32 %v2785_v4, %v3367_v54  ;;  %v3290_v7 = vadd.f32 %v3111_v16, %v2708_v0  ;;  %v2709_v27 = vmul.f32 0.31830987, %v6369_v62  ;;  %v6750_v15 = vld [vmem:[#allocation9_spill] sm:$0xff] }
 0x1dd   :  { %vm3761_vm6 = vcmp.eq.f32.partialorder %v3682_v29, %v3445_v33  ;;  %v3605_v39 = vfloor.f32 %v3526_v32  ;;  %v3115_v46 = vrot.slane %v6543_v36, %v5436_v40  ;;  %v4091_v10 = vrot.slane %v6483_v13, %v5457_v49 }
 0x1de   :  { %v4680_v24 = vsel %vm3761_vm6, %v4087_v31, %v4492_v58  ;;  %v3525_v17 = vmul.f32 0.5, %v3446_v6  ;;  %v3369_v1 = vfloor.f32 %v3290_v7  ;;  %v4496_v12 = vrot.slane %v6491_v21, %v5457_v49 }
 0x1df   :  { %v4758_v30 = vadd.f32 %v4757_v28, %v4680_v24  ;;  %v3684_v53 = vmul.f32 2.0, %v3605_v39  ;;  %v3291_v18 = vadd.f32 %v3115_v46, %v2709_v27  ;;  %v4099_v62 = vrot.slane %v6483_v13, %v5459_v50 }
 0x1e0   :  { %v3604_v55 = vfloor.f32 %v3525_v17  ;;  %v3448_v3 = vsub.f32 %v2787_v47, %v3369_v1  ;;  %v6559_v41 = vsub.f32 0.0, %v6550_v37  ;;  %v2788_v34 = vfloor.f32 %v2709_v27  ;;  %v6751_v47 = vld [vmem:[#allocation10_spill] sm:$0xff]  ;;  %v6752_v1 = vld [vmem:[#allocation11_spill] sm:$0xff] }
 0x1e1   :  { %v3370_v23 = vfloor.f32 %v3291_v18  ;;  %v2711_v59 = vmul.f32 0.31830987, %v6371_v20  ;;  %v3123_v11 = vrot.slane %v6543_v36, %v5440_v42  ;;  %v4504_v33 = vrot.slane %v6491_v21, %v5459_v50 }
 0x1e2   :  { %v3683_v31 = vmul.f32 2.0, %v3604_v55  ;;  %v3527_v5 = vmul.f32 0.5, %v3448_v3  ;;  %v4103_v2 = vrot.slane %v6550_v37, %v5436_v40  ;;  %vm3763_vm7 = vcmp.eq.f32.partialorder %v3684_v53, %v3447_v22 }
 0x1e3   :  { %v3449_v13 = vsub.f32 %v2788_v34, %v3370_v23  ;;  %v2790_v60 = vfloor.f32 %v2711_v59  ;;  %v3293_v58 = vadd.f32 %v3123_v11, %v2711_v59  ;;  %v2710_v8 = vmul.f32 0.31830987, %v6749_v63 }
 0x1e4   :  { %vm3762_vm8 = vcmp.eq.f32.partialorder %v3683_v31, %v3446_v6  ;;  %v3606_v56 = vfloor.f32 %v3527_v5  ;;  %v3119_v20 = vrot.slane %v6543_v36, %v5442_v43  ;;  %v4508_v25 = vrot.slane %v6559_v41, %v5436_v40 }
 0x1e5   :  { %v4681_v35 = vsel %vm3762_vm8, %v4091_v10, %v4496_v12  ;;  %v3528_v26 = vmul.f32 0.5, %v3449_v13  ;;  %v3372_v50 = vfloor.f32 %v3293_v58  ;;  %v4682_v21 = vsel %vm3763_vm7, %v4095_v61, %v4500_v38 }
 0x1e6   :  { %v4759_v57 = vadd.f32 %v4758_v30, %v4681_v35  ;;  %v3685_v14 = vmul.f32 2.0, %v3606_v56  ;;  %v3292_v51 = vadd.f32 %v3119_v20, %v2710_v8  ;;  %v2789_v0 = vfloor.f32 %v2710_v8 }
 0x1e7   :  { %v3607_v19 = vfloor.f32 %v3528_v26  ;;  %v3451_v22 = vsub.f32 %v2790_v60, %v3372_v50  ;;  %v2712_v4 = vmul.f32 0.31830987, %v6750_v15  ;;  %v3127_v52 = vrot.slane %v6543_v36, %v5447_v44 }
 0x1e8   :  { %vm3764_vm9 = vcmp.eq.f32.partialorder %v3685_v14, %v3448_v3  ;;  %v4760_v54 = vadd.f32 %v4759_v57, %v4682_v21  ;;  %v3371_v16 = vfloor.f32 %v3292_v51  ;;  %v4111_v40 = vrot.slane %v6550_v37, %v5440_v42 }
 0x1e9   :  { %v4683_v29 = vsel %vm3764_vm9, %v4099_v62, %v4504_v33  ;;  %v3686_v32 = vmul.f32 2.0, %v3607_v19  ;;  %v3530_v28 = vmul.f32 0.5, %v3451_v22  ;;  %v2791_v38 = vfloor.f32 %v2712_v4 }
 0x1ea   :  { %v3450_v61 = vsub.f32 %v2789_v0, %v3371_v16  ;;  %v3294_v6 = vadd.f32 %v3127_v52, %v2712_v4  ;;  %v2713_v7 = vmul.f32 0.31830987, %v6751_v47  ;;  %v4761_v39 = vadd.f32 %v4760_v54, %v4683_v29 }
 0x1eb   :  { %vm3765_vm10 = vcmp.eq.f32.partialorder %v3686_v32, %v3449_v13  ;;  %v3609_v27 = vfloor.f32 %v3530_v28  ;;  %v3131_v46 = vrot.slane %v6543_v36, %v5449_v45  ;;  %v2715_v30 = vmul.f32 0.31830987, %v6752_v1 }
 0x1ec   :  { %v4684_v24 = vsel %vm3765_vm10, %v4103_v2, %v4508_v25  ;;  %v3529_v17 = vmul.f32 0.5, %v3450_v61  ;;  %v3373_v10 = vfloor.f32 %v3294_v6  ;;  %v4107_v12 = vrot.slane %v6550_v37, %v5442_v43 }
 0x1ed   :  { %v3688_v53 = vmul.f32 2.0, %v3609_v27  ;;  %v4512_v18 = vrot.slane %v6559_v41, %v5442_v43  ;;  %v3295_v55 = vadd.f32 %v3131_v46, %v2713_v7  ;;  %v3139_v34 = vrot.slane %v6543_v36, %v5455_v48 }
 0x1ee   :  { %v3608_v3 = vfloor.f32 %v3529_v17  ;;  %v3452_v62 = vsub.f32 %v2791_v38, %v3373_v10  ;;  %v2714_v23 = vmul.f32 0.31830987, %v6408_v9  ;;  %v4762_v59 = vadd.f32 %v4761_v39, %v4684_v24 }
 0x1ef   :  { %v2792_v11 = vfloor.f32 %v2713_v7  ;;  %v3374_v31 = vfloor.f32 %v3295_v55  ;;  %v3135_v5 = vrot.slane %v6543_v36, %v5457_v49  ;;  %v2794_v13 = vfloor.f32 %v2715_v30 }
 0x1f0   :  { %v3687_v33 = vmul.f32 2.0, %v3608_v3  ;;  %v3531_v2 = vmul.f32 0.5, %v3452_v62  ;;  %v3297_v60 = vadd.f32 %v3139_v34, %v2715_v30  ;;  %vm3767_vm11 = vcmp.eq.f32.partialorder %v3688_v53, %v3451_v22 }
 0x1f1   :  { %v4516_v43 = vrot.slane %v6559_v41, %v5440_v42  ;;  %v3453_v58 = vsub.f32 %v2792_v11, %v3374_v31  ;;  %v3296_v56 = vadd.f32 %v3135_v5, %v2714_v23  ;;  %v4115_v9 = vrot.slane %v6550_v37, %v5447_v44 }
 0x1f2   :  { %vm3766_vm12 = vcmp.eq.f32.partialorder %v3687_v33, %v3450_v61  ;;  %v3610_v63 = vfloor.f32 %v3531_v2  ;;  %v3376_v8 = vfloor.f32 %v3297_v60  ;;  %v2793_v26 = vfloor.f32 %v2714_v23 }
 0x1f3   :  { %v4685_v20 = vsel %vm3766_vm12, %v4107_v12, %v4512_v18  ;;  %v3532_v35 = vmul.f32 0.5, %v3453_v58  ;;  %v3375_v36 = vfloor.f32 %v3296_v56  ;;  %v4520_v57 = vrot.slane %v6559_v41, %v5447_v44 }
 0x1f4   :  { %v4763_v25 = vadd.f32 %v4762_v59, %v4685_v20  ;;  %v3689_v50 = vmul.f32 2.0, %v3610_v63  ;;  %v3455_v21 = vsub.f32 %v2794_v13, %v3376_v8  ;;  %v4686_v42 = vsel %vm3767_vm11, %v4111_v40, %v4516_v43 }
 0x1f5   :  { %v3611_v14 = vfloor.f32 %v3532_v35  ;;  %v3454_v51 = vsub.f32 %v2793_v26, %v3375_v36  ;;  %v4119_v19 = vrot.slane %v6550_v37, %v5449_v45  ;;  %v4524_v15 = vrot.slane %v6559_v41, %v5449_v45 }
 0x1f6   :  { %vm3768_vm13 = vcmp.eq.f32.partialorder %v3689_v50, %v3452_v62  ;;  %v3534_v0 = vmul.f32 0.5, %v3455_v21  ;;  %v4764_v4 = vadd.f32 %v4763_v25, %v4686_v42  ;;  %v4123_v28 = vrot.slane %v6550_v37, %v5457_v49 }
 0x1f7   :  { %v3690_v54 = vmul.f32 2.0, %v3611_v14  ;;  %v3533_v16 = vmul.f32 0.5, %v3454_v51  ;;  %v4687_v52 = vsel %vm3768_vm13, %v4115_v9, %v4520_v57  ;;  %v4528_v40 = vrot.slane %v6559_v41, %v5457_v49 }
 0x1f8   :  { %v3613_v29 = vfloor.f32 %v3534_v0  ;;  %v4765_v32 = vadd.f32 %v4764_v4, %v4687_v52  ;;  %v4127_v45 = vrot.slane %v6550_v37, %v5455_v48  ;;  %v4532_v47 = vrot.slane %v6559_v41, %v5455_v48 }
 0x1f9   :  { %vm3769_vm14 = vcmp.eq.f32.partialorder %v3690_v54, %v3453_v58  ;;  %v3612_v44 = vfloor.f32 %v3533_v16  ;;  %vm4771_vm1 = vcmask 7168  }
 0x1fa   :  { %v3692_v22 = vmul.f32 2.0, %v3613_v29  ;;  %v4688_v61 = vsel %vm3769_vm14, %v4119_v19, %v4524_v15 }
 0x1fb   :  { %v3691_v38 = vmul.f32 2.0, %v3612_v44  ;;  %v4766_v6 = vadd.f32 %v4765_v32, %v4688_v61 }
 0x1fc   :  { %vm3771_vm0 = vcmp.eq.f32.partialorder %v3692_v22, %v3455_v21 }
 0x1fd   :  { %vm3770_vm15 = vcmp.eq.f32.partialorder %v3691_v38, %v3454_v51  ;;  %v4690_v27 = vsel %vm3771_vm0, %v4127_v45, %v4532_v47 }
 0x1fe   :  { %v4689_v7 = vsel %vm3770_vm15, %v4123_v28, %v4528_v40 }
 0x1ff   :  { %v4767_v39 = vadd.f32 %v4766_v6, %v4689_v7 }
 0x201   :  { %v4768_v46 = vadd.f32 %v4767_v39, %v4690_v27 }
 0x203   :  { %4769 = vadd.xlane.f32.xlu0 %v4768_v46 }
 0x28c   :  { %v4770_v24 = vpop.xlane.xlu0 %4769 }
 0x28d   :  { %4772 = vst.msk [vmem:[%s6616_s3] sm:$0xff] %vm4771_vm1, %v4770_v24 }
 0x28e   :  { %4777 = vsyncpa [#allocation3], 1 }
 0x28f   :  { %4778 = vsyncpa [#allocation5], 1 }

</bundles_post_ra>
